<compile_context>
chip_gen: v5e
topology: v5e:2x2
jax: 0.10.0
libtpu: 0.0.40
codegen_flags: <defaults>
</compile_context>

<pallas_src>
import math
import functools

import jax
import jax.numpy as jnp
from jax import lax
from jax.experimental import pallas as pl
from jax.experimental.pallas import tpu as pltpu

LANE = 128   # TPU lane width; final output is padded to this for dense stores.
SUBLANE = 8  # TPU sublane tile; batch is padded to a multiple of this.


# ----------------------------------------------------------------------------
# Fused Pallas kernel: one LSTM layer per grid step (+ Linear at last layer)
# ----------------------------------------------------------------------------
def seq2seq_layer_kernel(x_ref, wih_ref, whh_ref, b_ref, wlin_ref, blin_ref,
                         out_ref, act_ref, *, T, B_pad, H):
    """One grid step == one LSTM layer (12 total: 6 encoder + 6 decoder).

    x_ref    : (T*B_pad, H)    model input, sequence-major, zero-padded
    wih_ref  : (1, H, 4H)      this layer's transposed input weights
    whh_ref  : (1, H, 4H)      this layer's transposed recurrent weights
    b_ref    : (1, 1, 4H)      this layer's b_ih + b_hh
    wlin_ref : (H, O_pad)      transposed Linear weight, lane-padded
    blin_ref : (1, O_pad)      Linear bias, lane-padded
    out_ref  : (T*B_pad, O_pad) lane-dense output (written at last layer)
    act_ref  : (T*B_pad, H)    persistent VMEM scratch carrying activations
    Gate column order (prep-time reorder): [i, f, o, g].
    """
    layer = pl.program_id(0)
    n_layers = pl.num_programs(0)

    # Layer 0: seed the persistent activation scratch with the model input.
    @pl.when(layer == 0)
    def _():
        act_ref[...] = x_ref[...]

    w_ih = wih_ref[0]                               # (H, 4H)
    w_hh = whh_ref[0]                               # (H, 4H)
    bias = b_ref[0]                                 # (1, 4H)

    # Hoisted input projection for all T steps at once (single MXU matmul).
    act = act_ref[...]                              # (T*B_pad, H)
    gx = jnp.dot(act, w_ih,
                 precision=lax.Precision.HIGHEST,
                 preferred_element_type=jnp.float32) + bias       # (T*B_pad, 4H)

    h = jnp.zeros((B_pad, H), jnp.float32)
    c = jnp.zeros((B_pad, H), jnp.float32)
    for t in range(T):                              # fully unrolled recurrence
        gates = gx[t * B_pad:(t + 1) * B_pad] + jnp.dot(
            h, w_hh,
            precision=lax.Precision.HIGHEST,
            preferred_element_type=jnp.float32)                   # (B_pad, 4H)

        # One full-width sigmoid + one full-width tanh per step (2 EUP ops);
        # the 32-lane slices below only feed VPU multiplies/adds.
        sg = jax.nn.sigmoid(gates)                  # (B_pad, 4H)
        tg = jnp.tanh(gates)                        # (B_pad, 4H)
        i_g = sg[:, 0 * H:1 * H]
        f_g = sg[:, 1 * H:2 * H]
        o_g = sg[:, 2 * H:3 * H]
        g_g = tg[:, 3 * H:4 * H]

        c = f_g * c + i_g * g_g
        h = o_g * jnp.tanh(c)

        # Tile-aligned store of this step's hidden state (no concat).
        act_ref[pl.ds(t * B_pad, B_pad), :] = h

    # Final Linear after the last LSTM layer, lane-dense output.
    @pl.when(layer == n_layers - 1)
    def _():
        out_ref[...] = (jnp.dot(act_ref[...], wlin_ref[...],
                                precision=lax.Precision.HIGHEST,
                                preferred_element_type=jnp.float32)
                        + blin_ref[...])


# ----------------------------------------------------------------------------
# Weight preparation (runs in XLA, outside the kernel)
# ----------------------------------------------------------------------------
def _prep_lstm_stack(params, hidden_dim):
    """Stack per-layer (w_ih, w_hh, b_ih, b_hh) into uniform VMEM-friendly
    arrays: (L, H, 4H), (L, H, 4H), (L, 1, 4H). Layer-0 input weights are
    zero-padded on the input dim. Gate columns are reordered from PyTorch's
    [i, f, g, o] to the kernel's [i, f, o, g]."""
    H = hidden_dim

    def reorder_gates(a):  # last dim is 4H in order [i, f, g, o]
        return jnp.concatenate(
            [a[..., 0:2 * H], a[..., 3 * H:4 * H], a[..., 2 * H:3 * H]],
            axis=-1)

    wih_list, whh_list, b_list = [], [], []
    for (w_ih, w_hh, b_ih, b_hh) in params:
        w_ih_t = jnp.transpose(w_ih)                       # (d_in, 4H)
        d_in = w_ih_t.shape[0]
        assert d_in <= H, "input_dim > hidden_dim not supported"
        if d_in < H:
            w_ih_t = jnp.pad(w_ih_t, ((0, H - d_in), (0, 0)))
        wih_list.append(reorder_gates(w_ih_t))
        whh_list.append(reorder_gates(jnp.transpose(w_hh)))  # (H, 4H)
        b_list.append(reorder_gates((b_ih + b_hh).reshape(1, 4 * H)))
    return jnp.stack(wih_list), jnp.stack(whh_list), jnp.stack(b_list)


# ----------------------------------------------------------------------------
# Full model forward (eval mode, encoder_hidden=decoder_hidden=None, first=False)
# ----------------------------------------------------------------------------
@functools.partial(jax.jit, static_argnums=(4,))
def seq2seq_lstm_forward(x_btd, enc_params, dec_params, lin_params, hidden_dim):
    B, T, Din = x_btd.shape
    H = hidden_dim
    assert Din <= H, "input_dim > hidden_dim not supported by this kernel"

    # Pad batch up to the 8-row sublane tile so every per-step slice/store in
    # the kernel is tile-aligned.
    B_pad = max(SUBLANE, ((B + SUBLANE - 1) // SUBLANE) * SUBLANE)

    # batch_first (B, T, Din) -> sequence-major (T, B, Din) -> pad -> (T*B_pad, H)
    x = jnp.transpose(x_btd, (1, 0, 2)).astype(jnp.float32)
    x = jnp.pad(x, ((0, 0), (0, B_pad - B), (0, H - Din)))
    x2d = x.reshape(T * B_pad, H)

    # Stack all 12 layers' weights (encoder then decoder).
    wih_e, whh_e, b_e = _prep_lstm_stack(enc_params, H)
    wih_d, whh_d, b_d = _prep_lstm_stack(dec_params, H)
    wih = jnp.concatenate([wih_e, wih_d], axis=0)          # (12, H, 4H)
    whh = jnp.concatenate([whh_e, whh_d], axis=0)          # (12, H, 4H)
    bias = jnp.concatenate([b_e, b_d], axis=0)             # (12, 1, 4H)
    L = wih.shape[0]

    # Linear weights, lane-padded for dense stores.
    w_lin, b_lin = lin_params                               # (O, H), (O,)
    O = w_lin.shape[0]
    O_pad = max(LANE, ((O + LANE - 1) // LANE) * LANE)
    w_lin_t = jnp.pad(jnp.transpose(w_lin), ((0, 0), (0, O_pad - O)))
    b_lin_p = jnp.pad(b_lin, (0, O_pad - O)).reshape(1, O_pad)

    kernel = functools.partial(seq2seq_layer_kernel, T=T, B_pad=B_pad, H=H)
    out = pl.pallas_call(
        kernel,
        out_shape=jax.ShapeDtypeStruct((T * B_pad, O_pad), jnp.float32),
        grid_spec=pltpu.PrefetchScalarGridSpec(
            num_scalar_prefetch=0,
            grid=(L,),                               # one grid step per layer
            in_specs=[
                # model input: fetched once (constant block index)
                pl.BlockSpec((T * B_pad, H), lambda l: (0, 0)),
                # per-layer weights: streamed / double-buffered by Pallas
                pl.BlockSpec((1, H, 4 * H), lambda l: (l, 0, 0)),
                pl.BlockSpec((1, H, 4 * H), lambda l: (l, 0, 0)),
                pl.BlockSpec((1, 1, 4 * H), lambda l: (l, 0, 0)),
                # Linear weights: resident
                pl.BlockSpec((H, O_pad), lambda l: (0, 0)),
                pl.BlockSpec((1, O_pad), lambda l: (0, 0)),
            ],
            out_specs=pl.BlockSpec((T * B_pad, O_pad), lambda l: (0, 0)),
            scratch_shapes=[pltpu.VMEM((T * B_pad, H), jnp.float32)],
        ),
        compiler_params=pltpu.CompilerParams(
            dimension_semantics=("arbitrary",)),     # layers are serial
    )(x2d, wih, whh, bias, w_lin_t, b_lin_p)

    # Slice away lane / batch padding and return batch_first (B, T, O).
    out = out.reshape(T, B_pad, O_pad)[:, :B, :O]
    return jnp.transpose(out, (1, 0, 2))


# ----------------------------------------------------------------------------
# Parameter init (deterministic, PyTorch default U(-1/sqrt(H), 1/sqrt(H)))
# ----------------------------------------------------------------------------
def init_lstm_params(key, num_layers, input_dim, hidden_dim):
    k = 1.0 / math.sqrt(hidden_dim)
    params = []
    for layer in range(num_layers):
        d_in = input_dim if layer == 0 else hidden_dim
        key, k1, k2, k3, k4 = jax.random.split(key, 5)
        w_ih = jax.random.uniform(k1, (4 * hidden_dim, d_in), jnp.float32, -k, k)
        w_hh = jax.random.uniform(k2, (4 * hidden_dim, hidden_dim), jnp.float32, -k, k)
        b_ih = jax.random.uniform(k3, (4 * hidden_dim,), jnp.float32, -k, k)
        b_hh = jax.random.uniform(k4, (4 * hidden_dim,), jnp.float32, -k, k)
        params.append((w_ih, w_hh, b_ih, b_hh))
    return key, params


def init_linear_params(key, hidden_dim, output_dim):
    k = 1.0 / math.sqrt(hidden_dim)
    key, k1, k2 = jax.random.split(key, 3)
    w = jax.random.uniform(k1, (output_dim, hidden_dim), jnp.float32, -k, k)
    b = jax.random.uniform(k2, (output_dim,), jnp.float32, -k, k)
    return key, (w, b)


# ----------------------------------------------------------------------------
if __name__ == "__main__":
    # Small shapes consistent with the module's forward
    batch, seq_len = 2, 8
    input_dim, hidden_dim, output_dim = 8, 32, 4
    num_layers = 6

    key = jax.random.PRNGKey(0)
    key, x_key = jax.random.split(key)
    x = jax.random.normal(x_key, (batch, seq_len, input_dim), jnp.float32)

    key, enc_params = init_lstm_params(key, num_layers, input_dim, hidden_dim)
    key, dec_params = init_lstm_params(key, num_layers, hidden_dim, hidden_dim)
    key, lin_params = init_linear_params(key, hidden_dim, output_dim)

    out = seq2seq_lstm_forward(x, enc_params, dec_params, lin_params, hidden_dim)
    out = jax.block_until_ready(out)

    assert out.shape == (batch, seq_len, output_dim), out.shape
    assert jnp.all(jnp.isfinite(out))
    print("KERNEL_OK")
</pallas_src>

<mosaic_0001>
module attributes {stable_mosaic.version = 11 : i64} {
  func.func @seq2seq_layer_kernel(%arg0: i32, %arg1: memref<64x32xf32, #tpu.memory_space<vmem>>, %arg2: memref<1x32x128xf32, #tpu.memory_space<vmem>>, %arg3: memref<1x32x128xf32, #tpu.memory_space<vmem>>, %arg4: memref<1x1x128xf32, #tpu.memory_space<vmem>>, %arg5: memref<32x128xf32, #tpu.memory_space<vmem>>, %arg6: memref<1x128xf32, #tpu.memory_space<vmem>>, %arg7: memref<64x128xf32, #tpu.memory_space<vmem>>, %arg8: memref<64x32xf32, #tpu.memory_space<vmem>>) attributes {dimension_semantics = [#tpu.dimension_semantics<arbitrary>], iteration_bounds = array<i64: 12>, scalar_prefetch = 0 : i64, scratch_operands = 1 : i64, tpu.core_type = #tpu.core_type<tc>, window_params = [{pipeline_mode = #tpu.pipeline_mode<synchronous>, transform_indices = @transform_0, window_bounds = array<i64: 64, 32>}, {transform_indices = @transform_1, window_bounds = array<i64: 1, 32, 128>}, {transform_indices = @transform_2, window_bounds = array<i64: 1, 32, 128>}, {transform_indices = @transform_3, window_bounds = array<i64: 1, 1, 128>}, {pipeline_mode = #tpu.pipeline_mode<synchronous>, transform_indices = @transform_4, window_bounds = array<i64: 32, 128>}, {pipeline_mode = #tpu.pipeline_mode<synchronous>, transform_indices = @transform_5, window_bounds = array<i64: 1, 128>}, {pipeline_mode = #tpu.pipeline_mode<synchronous>, transform_indices = @transform_6, window_bounds = array<i64: 64, 128>}]} {
    %c0_i32 = arith.constant 0 : i32
    %0 = arith.cmpi eq, %arg0, %c0_i32 : i32
    %1 = arith.extui %0 : i1 to i32
    %c0_i32_0 = arith.constant 0 : i32
    %2 = arith.cmpi ne, %1, %c0_i32_0 : i32
    scf.if %2 {
      %c0_39 = arith.constant 0 : index
      %c0_40 = arith.constant 0 : index
      %170 = vector.load %arg1[%c0_39, %c0_40] : memref<64x32xf32, #tpu.memory_space<vmem>>, vector<64x32xf32>
      %c0_41 = arith.constant 0 : index
      %c0_42 = arith.constant 0 : index
      %171 = vector.load %arg8[%c0_41, %c0_42] : memref<64x32xf32, #tpu.memory_space<vmem>>, vector<64x32xf32>
      tpu.vector_store %arg8[%c0_41, %c0_42], %170 {strides = array<i32>} : memref<64x32xf32, #tpu.memory_space<vmem>>, vector<64x32xf32>,
    } else {
    }
    %c0 = arith.constant 0 : index
    %c0_1 = arith.constant 0 : index
    %c0_2 = arith.constant 0 : index
    %3 = vector.load %arg2[%c0, %c0_1, %c0_2] : memref<1x32x128xf32, #tpu.memory_space<vmem>>, vector<1x32x128xf32>
    %4 = vector.shape_cast %3 : vector<1x32x128xf32> to vector<32x128xf32>
    %c0_3 = arith.constant 0 : index
    %c0_4 = arith.constant 0 : index
    %c0_5 = arith.constant 0 : index
    %5 = vector.load %arg3[%c0_3, %c0_4, %c0_5] : memref<1x32x128xf32, #tpu.memory_space<vmem>>, vector<1x32x128xf32>
    %6 = vector.shape_cast %5 : vector<1x32x128xf32> to vector<32x128xf32>
    %c0_6 = arith.constant 0 : index
    %c0_7 = arith.constant 0 : index
    %c0_8 = arith.constant 0 : index
    %7 = vector.load %arg4[%c0_6, %c0_7, %c0_8] : memref<1x1x128xf32, #tpu.memory_space<vmem>>, vector<1x1x128xf32>
    %8 = vector.shape_cast %7 : vector<1x1x128xf32> to vector<1x128xf32>
    %c0_9 = arith.constant 0 : index
    %c0_10 = arith.constant 0 : index
    %9 = vector.load %arg8[%c0_9, %c0_10] : memref<64x32xf32, #tpu.memory_space<vmem>>, vector<64x32xf32>
    %cst = arith.constant dense<0.000000e+00> : vector<64x128xf32>
    %10 = tpu.matmul %9, %4, %cst {dimension_numbers = #tpu.dot_dimension_numbers<[1], [0], [0], [1], [0, 0, 1, 1], [], []>, precision = #tpu.contract_precision<fp32>} : vector<64x32xf32>, vector<32x128xf32>, vector<64x128xf32> -> vector<64x128xf32>
    %11 = vector.broadcast %8 : vector<1x128xf32> to vector<64x128xf32>
    %12 = arith.addf %10, %11 : vector<64x128xf32>
    %cst_11 = arith.constant 0.000000e+00 : f32
    %13 = vector.broadcast %cst_11 : f32 to vector<8x32xf32>
    %cst_12 = arith.constant 0.000000e+00 : f32
    %14 = vector.broadcast %cst_12 : f32 to vector<8x32xf32>
    %15 = vector.extract_strided_slice %12 {offsets = [0, 0], sizes = [8, 128], strides = [1, 1]} : vector<64x128xf32> to vector<8x128xf32>
    %cst_13 = arith.constant dense<0.000000e+00> : vector<8x128xf32>
    %16 = tpu.matmul %13, %6, %cst_13 {dimension_numbers = #tpu.dot_dimension_numbers<[1], [0], [0], [1], [0, 0, 1, 1], [], []>, precision = #tpu.contract_precision<fp32>} : vector<8x32xf32>, vector<32x128xf32>, vector<8x128xf32> -> vector<8x128xf32>
    %17 = arith.addf %15, %16 : vector<8x128xf32>
    %18 = arith.negf %17 : vector<8x128xf32>
    %19 = math.exp %18 : vector<8x128xf32>
    %cst_14 = arith.constant 1.000000e+00 : f32
    %20 = vector.broadcast %cst_14 : f32 to vector<8x128xf32>
    %21 = arith.addf %20, %19 : vector<8x128xf32>
    %22 = arith.divf %20, %21 : vector<8x128xf32>
    %23 = math.tanh %17 : vector<8x128xf32>
    %24 = vector.extract_strided_slice %22 {offsets = [0, 0], sizes = [8, 32], strides = [1, 1]} : vector<8x128xf32> to vector<8x32xf32>
    %25 = vector.extract_strided_slice %22 {offsets = [0, 32], sizes = [8, 32], strides = [1, 1]} : vector<8x128xf32> to vector<8x32xf32>
    %26 = vector.extract_strided_slice %22 {offsets = [0, 64], sizes = [8, 32], strides = [1, 1]} : vector<8x128xf32> to vector<8x32xf32>
    %27 = vector.extract_strided_slice %23 {offsets = [0, 96], sizes = [8, 32], strides = [1, 1]} : vector<8x128xf32> to vector<8x32xf32>
    %28 = arith.mulf %25, %14 : vector<8x32xf32>
    %29 = arith.mulf %24, %27 : vector<8x32xf32>
    %30 = arith.addf %28, %29 : vector<8x32xf32>
    %31 = math.tanh %30 : vector<8x32xf32>
    %32 = arith.mulf %26, %31 : vector<8x32xf32>
    %c0_15 = arith.constant 0 : index
    %c0_16 = arith.constant 0 : index
    %33 = vector.load %arg8[%c0_15, %c0_16] : memref<64x32xf32, #tpu.memory_space<vmem>>, vector<8x32xf32>
    tpu.vector_store %arg8[%c0_15, %c0_16], %32 {strides = array<i32>} : memref<64x32xf32, #tpu.memory_space<vmem>>, vector<8x32xf32>,
    %34 = vector.extract_strided_slice %12 {offsets = [8, 0], sizes = [8, 128], strides = [1, 1]} : vector<64x128xf32> to vector<8x128xf32>
    %cst_17 = arith.constant dense<0.000000e+00> : vector<8x128xf32>
    %35 = tpu.matmul %32, %6, %cst_17 {dimension_numbers = #tpu.dot_dimension_numbers<[1], [0], [0], [1], [0, 0, 1, 1], [], []>, precision = #tpu.contract_precision<fp32>} : vector<8x32xf32>, vector<32x128xf32>, vector<8x128xf32> -> vector<8x128xf32>
    %36 = arith.addf %34, %35 : vector<8x128xf32>
    %37 = arith.negf %36 : vector<8x128xf32>
    %38 = math.exp %37 : vector<8x128xf32>
    %cst_18 = arith.constant 1.000000e+00 : f32
    %39 = vector.broadcast %cst_18 : f32 to vector<8x128xf32>
    %40 = arith.addf %39, %38 : vector<8x128xf32>
    %41 = arith.divf %39, %40 : vector<8x128xf32>
    %42 = math.tanh %36 : vector<8x128xf32>
    %43 = vector.extract_strided_slice %41 {offsets = [0, 0], sizes = [8, 32], strides = [1, 1]} : vector<8x128xf32> to vector<8x32xf32>
    %44 = vector.extract_strided_slice %41 {offsets = [0, 32], sizes = [8, 32], strides = [1, 1]} : vector<8x128xf32> to vector<8x32xf32>
    %45 = vector.extract_strided_slice %41 {offsets = [0, 64], sizes = [8, 32], strides = [1, 1]} : vector<8x128xf32> to vector<8x32xf32>
    %46 = vector.extract_strided_slice %42 {offsets = [0, 96], sizes = [8, 32], strides = [1, 1]} : vector<8x128xf32> to vector<8x32xf32>
    %47 = arith.mulf %44, %30 : vector<8x32xf32>
    %48 = arith.mulf %43, %46 : vector<8x32xf32>
    %49 = arith.addf %47, %48 : vector<8x32xf32>
    %50 = math.tanh %49 : vector<8x32xf32>
    %51 = arith.mulf %45, %50 : vector<8x32xf32>
    %c8 = arith.constant 8 : index
    %c0_19 = arith.constant 0 : index
    %52 = vector.load %arg8[%c8, %c0_19] : memref<64x32xf32, #tpu.memory_space<vmem>>, vector<8x32xf32>
    tpu.vector_store %arg8[%c8, %c0_19], %51 {strides = array<i32>} : memref<64x32xf32, #tpu.memory_space<vmem>>, vector<8x32xf32>,
    %53 = vector.extract_strided_slice %12 {offsets = [16, 0], sizes = [8, 128], strides = [1, 1]} : vector<64x128xf32> to vector<8x128xf32>
    %cst_20 = arith.constant dense<0.000000e+00> : vector<8x128xf32>
    %54 = tpu.matmul %51, %6, %cst_20 {dimension_numbers = #tpu.dot_dimension_numbers<[1], [0], [0], [1], [0, 0, 1, 1], [], []>, precision = #tpu.contract_precision<fp32>} : vector<8x32xf32>, vector<32x128xf32>, vector<8x128xf32> -> vector<8x128xf32>
    %55 = arith.addf %53, %54 : vector<8x128xf32>
    %56 = arith.negf %55 : vector<8x128xf32>
    %57 = math.exp %56 : vector<8x128xf32>
    %cst_21 = arith.constant 1.000000e+00 : f32
    %58 = vector.broadcast %cst_21 : f32 to vector<8x128xf32>
    %59 = arith.addf %58, %57 : vector<8x128xf32>
    %60 = arith.divf %58, %59 : vector<8x128xf32>
    %61 = math.tanh %55 : vector<8x128xf32>
    %62 = vector.extract_strided_slice %60 {offsets = [0, 0], sizes = [8, 32], strides = [1, 1]} : vector<8x128xf32> to vector<8x32xf32>
    %63 = vector.extract_strided_slice %60 {offsets = [0, 32], sizes = [8, 32], strides = [1, 1]} : vector<8x128xf32> to vector<8x32xf32>
    %64 = vector.extract_strided_slice %60 {offsets = [0, 64], sizes = [8, 32], strides = [1, 1]} : vector<8x128xf32> to vector<8x32xf32>
    %65 = vector.extract_strided_slice %61 {offsets = [0, 96], sizes = [8, 32], strides = [1, 1]} : vector<8x128xf32> to vector<8x32xf32>
    %66 = arith.mulf %63, %49 : vector<8x32xf32>
    %67 = arith.mulf %62, %65 : vector<8x32xf32>
    %68 = arith.addf %66, %67 : vector<8x32xf32>
    %69 = math.tanh %68 : vector<8x32xf32>
    %70 = arith.mulf %64, %69 : vector<8x32xf32>
    %c16 = arith.constant 16 : index
    %c0_22 = arith.constant 0 : index
    %71 = vector.load %arg8[%c16, %c0_22] : memref<64x32xf32, #tpu.memory_space<vmem>>, vector<8x32xf32>
    tpu.vector_store %arg8[%c16, %c0_22], %70 {strides = array<i32>} : memref<64x32xf32, #tpu.memory_space<vmem>>, vector<8x32xf32>,
    %72 = vector.extract_strided_slice %12 {offsets = [24, 0], sizes = [8, 128], strides = [1, 1]} : vector<64x128xf32> to vector<8x128xf32>
    %cst_23 = arith.constant dense<0.000000e+00> : vector<8x128xf32>
    %73 = tpu.matmul %70, %6, %cst_23 {dimension_numbers = #tpu.dot_dimension_numbers<[1], [0], [0], [1], [0, 0, 1, 1], [], []>, precision = #tpu.contract_precision<fp32>} : vector<8x32xf32>, vector<32x128xf32>, vector<8x128xf32> -> vector<8x128xf32>
    %74 = arith.addf %72, %73 : vector<8x128xf32>
    %75 = arith.negf %74 : vector<8x128xf32>
    %76 = math.exp %75 : vector<8x128xf32>
    %cst_24 = arith.constant 1.000000e+00 : f32
    %77 = vector.broadcast %cst_24 : f32 to vector<8x128xf32>
    %78 = arith.addf %77, %76 : vector<8x128xf32>
    %79 = arith.divf %77, %78 : vector<8x128xf32>
    %80 = math.tanh %74 : vector<8x128xf32>
    %81 = vector.extract_strided_slice %79 {offsets = [0, 0], sizes = [8, 32], strides = [1, 1]} : vector<8x128xf32> to vector<8x32xf32>
    %82 = vector.extract_strided_slice %79 {offsets = [0, 32], sizes = [8, 32], strides = [1, 1]} : vector<8x128xf32> to vector<8x32xf32>
    %83 = vector.extract_strided_slice %79 {offsets = [0, 64], sizes = [8, 32], strides = [1, 1]} : vector<8x128xf32> to vector<8x32xf32>
    %84 = vector.extract_strided_slice %80 {offsets = [0, 96], sizes = [8, 32], strides = [1, 1]} : vector<8x128xf32> to vector<8x32xf32>
    %85 = arith.mulf %82, %68 : vector<8x32xf32>
    %86 = arith.mulf %81, %84 : vector<8x32xf32>
    %87 = arith.addf %85, %86 : vector<8x32xf32>
    %88 = math.tanh %87 : vector<8x32xf32>
    %89 = arith.mulf %83, %88 : vector<8x32xf32>
    %c24 = arith.constant 24 : index
    %c0_25 = arith.constant 0 : index
    %90 = vector.load %arg8[%c24, %c0_25] : memref<64x32xf32, #tpu.memory_space<vmem>>, vector<8x32xf32>
    tpu.vector_store %arg8[%c24, %c0_25], %89 {strides = array<i32>} : memref<64x32xf32, #tpu.memory_space<vmem>>, vector<8x32xf32>,
    %91 = vector.extract_strided_slice %12 {offsets = [32, 0], sizes = [8, 128], strides = [1, 1]} : vector<64x128xf32> to vector<8x128xf32>
    %cst_26 = arith.constant dense<0.000000e+00> : vector<8x128xf32>
    %92 = tpu.matmul %89, %6, %cst_26 {dimension_numbers = #tpu.dot_dimension_numbers<[1], [0], [0], [1], [0, 0, 1, 1], [], []>, precision = #tpu.contract_precision<fp32>} : vector<8x32xf32>, vector<32x128xf32>, vector<8x128xf32> -> vector<8x128xf32>
    %93 = arith.addf %91, %92 : vector<8x128xf32>
    %94 = arith.negf %93 : vector<8x128xf32>
    %95 = math.exp %94 : vector<8x128xf32>
    %cst_27 = arith.constant 1.000000e+00 : f32
    %96 = vector.broadcast %cst_27 : f32 to vector<8x128xf32>
    %97 = arith.addf %96, %95 : vector<8x128xf32>
    %98 = arith.divf %96, %97 : vector<8x128xf32>
    %99 = math.tanh %93 : vector<8x128xf32>
    %100 = vector.extract_strided_slice %98 {offsets = [0, 0], sizes = [8, 32], strides = [1, 1]} : vector<8x128xf32> to vector<8x32xf32>
    %101 = vector.extract_strided_slice %98 {offsets = [0, 32], sizes = [8, 32], strides = [1, 1]} : vector<8x128xf32> to vector<8x32xf32>
    %102 = vector.extract_strided_slice %98 {offsets = [0, 64], sizes = [8, 32], strides = [1, 1]} : vector<8x128xf32> to vector<8x32xf32>
    %103 = vector.extract_strided_slice %99 {offsets = [0, 96], sizes = [8, 32], strides = [1, 1]} : vector<8x128xf32> to vector<8x32xf32>
    %104 = arith.mulf %101, %87 : vector<8x32xf32>
    %105 = arith.mulf %100, %103 : vector<8x32xf32>
    %106 = arith.addf %104, %105 : vector<8x32xf32>
    %107 = math.tanh %106 : vector<8x32xf32>
    %108 = arith.mulf %102, %107 : vector<8x32xf32>
    %c32 = arith.constant 32 : index
    %c0_28 = arith.constant 0 : index
    %109 = vector.load %arg8[%c32, %c0_28] : memref<64x32xf32, #tpu.memory_space<vmem>>, vector<8x32xf32>
    tpu.vector_store %arg8[%c32, %c0_28], %108 {strides = array<i32>} : memref<64x32xf32, #tpu.memory_space<vmem>>, vector<8x32xf32>,
    %110 = vector.extract_strided_slice %12 {offsets = [40, 0], sizes = [8, 128], strides = [1, 1]} : vector<64x128xf32> to vector<8x128xf32>
    %cst_29 = arith.constant dense<0.000000e+00> : vector<8x128xf32>
    %111 = tpu.matmul %108, %6, %cst_29 {dimension_numbers = #tpu.dot_dimension_numbers<[1], [0], [0], [1], [0, 0, 1, 1], [], []>, precision = #tpu.contract_precision<fp32>} : vector<8x32xf32>, vector<32x128xf32>, vector<8x128xf32> -> vector<8x128xf32>
    %112 = arith.addf %110, %111 : vector<8x128xf32>
    %113 = arith.negf %112 : vector<8x128xf32>
    %114 = math.exp %113 : vector<8x128xf32>
    %cst_30 = arith.constant 1.000000e+00 : f32
    %115 = vector.broadcast %cst_30 : f32 to vector<8x128xf32>
    %116 = arith.addf %115, %114 : vector<8x128xf32>
    %117 = arith.divf %115, %116 : vector<8x128xf32>
    %118 = math.tanh %112 : vector<8x128xf32>
    %119 = vector.extract_strided_slice %117 {offsets = [0, 0], sizes = [8, 32], strides = [1, 1]} : vector<8x128xf32> to vector<8x32xf32>
    %120 = vector.extract_strided_slice %117 {offsets = [0, 32], sizes = [8, 32], strides = [1, 1]} : vector<8x128xf32> to vector<8x32xf32>
    %121 = vector.extract_strided_slice %117 {offsets = [0, 64], sizes = [8, 32], strides = [1, 1]} : vector<8x128xf32> to vector<8x32xf32>
    %122 = vector.extract_strided_slice %118 {offsets = [0, 96], sizes = [8, 32], strides = [1, 1]} : vector<8x128xf32> to vector<8x32xf32>
    %123 = arith.mulf %120, %106 : vector<8x32xf32>
    %124 = arith.mulf %119, %122 : vector<8x32xf32>
    %125 = arith.addf %123, %124 : vector<8x32xf32>
    %126 = math.tanh %125 : vector<8x32xf32>
    %127 = arith.mulf %121, %126 : vector<8x32xf32>
    %c40 = arith.constant 40 : index
    %c0_31 = arith.constant 0 : index
    %128 = vector.load %arg8[%c40, %c0_31] : memref<64x32xf32, #tpu.memory_space<vmem>>, vector<8x32xf32>
    tpu.vector_store %arg8[%c40, %c0_31], %127 {strides = array<i32>} : memref<64x32xf32, #tpu.memory_space<vmem>>, vector<8x32xf32>,
    %129 = vector.extract_strided_slice %12 {offsets = [48, 0], sizes = [8, 128], strides = [1, 1]} : vector<64x128xf32> to vector<8x128xf32>
    %cst_32 = arith.constant dense<0.000000e+00> : vector<8x128xf32>
    %130 = tpu.matmul %127, %6, %cst_32 {dimension_numbers = #tpu.dot_dimension_numbers<[1], [0], [0], [1], [0, 0, 1, 1], [], []>, precision = #tpu.contract_precision<fp32>} : vector<8x32xf32>, vector<32x128xf32>, vector<8x128xf32> -> vector<8x128xf32>
    %131 = arith.addf %129, %130 : vector<8x128xf32>
    %132 = arith.negf %131 : vector<8x128xf32>
    %133 = math.exp %132 : vector<8x128xf32>
    %cst_33 = arith.constant 1.000000e+00 : f32
    %134 = vector.broadcast %cst_33 : f32 to vector<8x128xf32>
    %135 = arith.addf %134, %133 : vector<8x128xf32>
    %136 = arith.divf %134, %135 : vector<8x128xf32>
    %137 = math.tanh %131 : vector<8x128xf32>
    %138 = vector.extract_strided_slice %136 {offsets = [0, 0], sizes = [8, 32], strides = [1, 1]} : vector<8x128xf32> to vector<8x32xf32>
    %139 = vector.extract_strided_slice %136 {offsets = [0, 32], sizes = [8, 32], strides = [1, 1]} : vector<8x128xf32> to vector<8x32xf32>
    %140 = vector.extract_strided_slice %136 {offsets = [0, 64], sizes = [8, 32], strides = [1, 1]} : vector<8x128xf32> to vector<8x32xf32>
    %141 = vector.extract_strided_slice %137 {offsets = [0, 96], sizes = [8, 32], strides = [1, 1]} : vector<8x128xf32> to vector<8x32xf32>
    %142 = arith.mulf %139, %125 : vector<8x32xf32>
    %143 = arith.mulf %138, %141 : vector<8x32xf32>
    %144 = arith.addf %142, %143 : vector<8x32xf32>
    %145 = math.tanh %144 : vector<8x32xf32>
    %146 = arith.mulf %140, %145 : vector<8x32xf32>
    %c48 = arith.constant 48 : index
    %c0_34 = arith.constant 0 : index
    %147 = vector.load %arg8[%c48, %c0_34] : memref<64x32xf32, #tpu.memory_space<vmem>>, vector<8x32xf32>
    tpu.vector_store %arg8[%c48, %c0_34], %146 {strides = array<i32>} : memref<64x32xf32, #tpu.memory_space<vmem>>, vector<8x32xf32>,
    %148 = vector.extract_strided_slice %12 {offsets = [56, 0], sizes = [8, 128], strides = [1, 1]} : vector<64x128xf32> to vector<8x128xf32>
    %cst_35 = arith.constant dense<0.000000e+00> : vector<8x128xf32>
    %149 = tpu.matmul %146, %6, %cst_35 {dimension_numbers = #tpu.dot_dimension_numbers<[1], [0], [0], [1], [0, 0, 1, 1], [], []>, precision = #tpu.contract_precision<fp32>} : vector<8x32xf32>, vector<32x128xf32>, vector<8x128xf32> -> vector<8x128xf32>
    %150 = arith.addf %148, %149 : vector<8x128xf32>
    %151 = arith.negf %150 : vector<8x128xf32>
    %152 = math.exp %151 : vector<8x128xf32>
    %cst_36 = arith.constant 1.000000e+00 : f32
    %153 = vector.broadcast %cst_36 : f32 to vector<8x128xf32>
    %154 = arith.addf %153, %152 : vector<8x128xf32>
    %155 = arith.divf %153, %154 : vector<8x128xf32>
    %156 = math.tanh %150 : vector<8x128xf32>
    %157 = vector.extract_strided_slice %155 {offsets = [0, 0], sizes = [8, 32], strides = [1, 1]} : vector<8x128xf32> to vector<8x32xf32>
    %158 = vector.extract_strided_slice %155 {offsets = [0, 32], sizes = [8, 32], strides = [1, 1]} : vector<8x128xf32> to vector<8x32xf32>
    %159 = vector.extract_strided_slice %155 {offsets = [0, 64], sizes = [8, 32], strides = [1, 1]} : vector<8x128xf32> to vector<8x32xf32>
    %160 = vector.extract_strided_slice %156 {offsets = [0, 96], sizes = [8, 32], strides = [1, 1]} : vector<8x128xf32> to vector<8x32xf32>
    %161 = arith.mulf %158, %144 : vector<8x32xf32>
    %162 = arith.mulf %157, %160 : vector<8x32xf32>
    %163 = arith.addf %161, %162 : vector<8x32xf32>
    %164 = math.tanh %163 : vector<8x32xf32>
    %165 = arith.mulf %159, %164 : vector<8x32xf32>
    %c56 = arith.constant 56 : index
    %c0_37 = arith.constant 0 : index
    %166 = vector.load %arg8[%c56, %c0_37] : memref<64x32xf32, #tpu.memory_space<vmem>>, vector<8x32xf32>
    tpu.vector_store %arg8[%c56, %c0_37], %165 {strides = array<i32>} : memref<64x32xf32, #tpu.memory_space<vmem>>, vector<8x32xf32>,
    %c11_i32 = arith.constant 11 : i32
    %167 = arith.cmpi eq, %arg0, %c11_i32 : i32
    %168 = arith.extui %167 : i1 to i32
    %c0_i32_38 = arith.constant 0 : i32
    %169 = arith.cmpi ne, %168, %c0_i32_38 : i32
    scf.if %169 {
      %c0_39 = arith.constant 0 : index
      %c0_40 = arith.constant 0 : index
      %170 = vector.load %arg8[%c0_39, %c0_40] : memref<64x32xf32, #tpu.memory_space<vmem>>, vector<64x32xf32>
      %c0_41 = arith.constant 0 : index
      %c0_42 = arith.constant 0 : index
      %171 = vector.load %arg5[%c0_41, %c0_42] : memref<32x128xf32, #tpu.memory_space<vmem>>, vector<32x128xf32>
      %cst_43 = arith.constant dense<0.000000e+00> : vector<64x128xf32>
      %172 = tpu.matmul %170, %171, %cst_43 {dimension_numbers = #tpu.dot_dimension_numbers<[1], [0], [0], [1], [0, 0, 1, 1], [], []>, precision = #tpu.contract_precision<fp32>} : vector<64x32xf32>, vector<32x128xf32>, vector<64x128xf32> -> vector<64x128xf32>
      %c0_44 = arith.constant 0 : index
      %c0_45 = arith.constant 0 : index
      %173 = vector.load %arg6[%c0_44, %c0_45] : memref<1x128xf32, #tpu.memory_space<vmem>>, vector<1x128xf32>
      %174 = vector.broadcast %173 : vector<1x128xf32> to vector<64x128xf32>
      %175 = arith.addf %172, %174 : vector<64x128xf32>
      %c0_46 = arith.constant 0 : index
      %c0_47 = arith.constant 0 : index
      %176 = vector.load %arg7[%c0_46, %c0_47] : memref<64x128xf32, #tpu.memory_space<vmem>>, vector<64x128xf32>
      tpu.vector_store %arg7[%c0_46, %c0_47], %175 {strides = array<i32>} : memref<64x128xf32, #tpu.memory_space<vmem>>, vector<64x128xf32>,
    } else {
    }
    return
  }
  func.func @transform_0(%arg0: i32) -> (i32, i32) {
    %c0_i32 = arith.constant 0 : i32
    %c0_i32_0 = arith.constant 0 : i32
    %c0_i32_1 = arith.constant 0 : i32
    return %c0_i32, %c0_i32_0 : i32, i32
  }
  func.func @transform_1(%arg0: i32) -> (i32, i32, i32) {
    %c0_i32 = arith.constant 0 : i32
    %c0_i32_0 = arith.constant 0 : i32
    %c0_i32_1 = arith.constant 0 : i32
    return %arg0, %c0_i32, %c0_i32_0 : i32, i32, i32
  }
  func.func @transform_2(%arg0: i32) -> (i32, i32, i32) {
    %c0_i32 = arith.constant 0 : i32
    %c0_i32_0 = arith.constant 0 : i32
    %c0_i32_1 = arith.constant 0 : i32
    return %arg0, %c0_i32, %c0_i32_0 : i32, i32, i32
  }
  func.func @transform_3(%arg0: i32) -> (i32, i32, i32) {
    %c0_i32 = arith.constant 0 : i32
    %c0_i32_0 = arith.constant 0 : i32
    %c0_i32_1 = arith.constant 0 : i32
    return %arg0, %c0_i32, %c0_i32_0 : i32, i32, i32
  }
  func.func @transform_4(%arg0: i32) -> (i32, i32) {
    %c0_i32 = arith.constant 0 : i32
    %c0_i32_0 = arith.constant 0 : i32
    %c0_i32_1 = arith.constant 0 : i32
    return %c0_i32, %c0_i32_0 : i32, i32
  }
  func.func @transform_5(%arg0: i32) -> (i32, i32) {
    %c0_i32 = arith.constant 0 : i32
    %c0_i32_0 = arith.constant 0 : i32
    %c0_i32_1 = arith.constant 0 : i32
    return %c0_i32, %c0_i32_0 : i32, i32
  }
  func.func @transform_6(%arg0: i32) -> (i32, i32) {
    %c0_i32 = arith.constant 0 : i32
    %c0_i32_0 = arith.constant 0 : i32
    %c0_i32_1 = arith.constant 0 : i32
    return %c0_i32, %c0_i32_0 : i32, i32
  }
}

</mosaic_0001>

<bundles_post_ra>
// kernel: seq2seq_lstm_forward.1
= control target key start
LH: loop header
LB: loop body
LE: loop exit
PB: predicated region body
PF: predicated region fallthrough
CT: control target
= control target key end

     0   :  { %s3236_s21 = smov 0   ;;  %s3934_s0 = inlined_call_operand.vmem [shape: f32[64,32], index: 0, kind: input, shape index: {}]   ;;  %s3935_s1 = inlined_call_operand.vmem [shape: f32[12,32,128], index: 1, kind: input, shape index: {}]   ;;  %s3936_s2 = inlined_call_operand.vmem [shape: f32[12,32,128], index: 2, kind: input, shape index: {}]   ;;  %s3937_s3 = inlined_call_operand.vmem [shape: f32[12,1,128], index: 3, kind: input, shape index: {}]   ;;  %s3938_s4 = inlined_call_operand.vmem [shape: f32[32,128], index: 4, kind: input, shape index: {}]   ;;  %s3939_s5 = inlined_call_operand.vmem [shape: f32[1,128], index: 5, kind: input, shape index: {}]   ;;  %s3940_s6 = inlined_call_operand.vmem [shape: f32[64,128], index: 6, kind: output, shape index: {}]  }
   0x1 LB: > { %s3242_s22 = sadd.s32 4294967295, %s3196_s21   ;;  %p3086_p0 = scmp.ge.s32.totalorder %s3196_s21, 1  ;;  %s3196_s21 = sphi %s3236_s21, %s16_s21  }
   0x2   : > { %p225_p1 = scmp.lt.s32.totalorder %s3196_s21, 13 }
   0x4   : > { %p226_p2 = pnand %p3086_p0, %p225_p1 }
   0x5   : > { %p258_p3 = scmp.lt.s32.totalorder (!%p226_p2), %s3242_s22, 11  ;;  %p3091_p4 = scmp.ne.s32.totalorder (!%p226_p2), %s3242_s22, 0 }
   0x6   : > { %229 = sbr.rel (%p226_p2) target bundleno = 5203 (0x1453), region = 44 }
   0xb   : > { %s3248_s23 = scalar_select %p258_p3, %s3242_s22, 11 }
   0xc   : > { %274 = sbr.rel (%p3091_p4) target bundleno = 26 (0x1a), region = 48 }
   0xd   : > { %s3103_s24 = sshll.u32 %s3248_s23, 5  ;;  %s270_s27 = scalar_lea.vmem %s3937_s3, %s3248_s23 }
   0xe   : > { %s262_s30 = scalar_lea.vmem %s3935_s1, %s3103_s24  ;;  %s3261_s9 = scalar_lea.vmem %s3936_s2, %s3103_s24 }
  0x11   : > { %v275_v0 = vld [vmem:[%s3934_s0] sm:$0xff]  ;;  %vm283_vm0 = vcmask 261120   ;;  %v276_v1 = vld [vmem:[%s3934_s0 + $0x8] sm:$0xff]  ;;  %v277_v2 = vld [vmem:[%s3934_s0 + $0x10] sm:$0xff] }
  0x12   : > { %284 = vst.msk [vmem:[#allocation2] sm:$0xff] %vm283_vm0, %v275_v0  ;;  %v278_v3 = vld [vmem:[%s3934_s0 + $0x18] sm:$0xff]  ;;  %v279_v4 = vld [vmem:[%s3934_s0 + $0x20] sm:$0xff]  ;;  %v280_v5 = vld [vmem:[%s3934_s0 + $0x28] sm:$0xff] }
  0x13   : > { %285 = vst.msk [vmem:[#allocation2 + $0x8] sm:$0xff] %vm283_vm0, %v276_v1  ;;  %v281_v6 = vld [vmem:[%s3934_s0 + $0x30] sm:$0xff]  ;;  %v282_v7 = vld [vmem:[%s3934_s0 + $0x38] sm:$0xff] }
  0x14   : > { %286 = vst.msk [vmem:[#allocation2 + $0x10] sm:$0xff] %vm283_vm0, %v277_v2 }
  0x15   : > { %287 = vst.msk [vmem:[#allocation2 + $0x18] sm:$0xff] %vm283_vm0, %v278_v3 }
  0x16   : > { %288 = vst.msk [vmem:[#allocation2 + $0x20] sm:$0xff] %vm283_vm0, %v279_v4 }
  0x17   : > { %289 = vst.msk [vmem:[#allocation2 + $0x28] sm:$0xff] %vm283_vm0, %v280_v5 }
  0x18   : > { %290 = vst.msk [vmem:[#allocation2 + $0x30] sm:$0xff] %vm283_vm0, %v281_v6 }
  0x19   : > { %291 = vst.msk [vmem:[#allocation2 + $0x38] sm:$0xff] %vm283_vm0, %v282_v7 }
  0x1a PF: > { %v295_v8 = vld [vmem:[%s262_s30 + $0x18] sm:$0xff]  ;;  %v294_v9 = vld [vmem:[%s262_s30 + $0x10] sm:$0xff]  ;;  %v293_v10 = vld [vmem:[%s262_s30 + $0x8] sm:$0xff]  ;;  %vm312_vm1 = vcmask 261120   ;;  %s3199_s23 = smov 32   ;;  %p3100_p5 = scmp.ne.s32.totalorder %s3242_s22, 11 }
  0x1b   : > { %v3288_v11 = vand.u32 4294901760, %v295_v8  ;;  %v3290_v12 = vand.u32 4294901760, %v294_v9  ;;  %v3292_v13 = vand.u32 4294901760, %v293_v10  ;;  %v292_v14 = vld [vmem:[%s262_s30] sm:$0xff]  ;;  %v299_v16 = vld [vmem:[%s3261_s9 + $0x18] sm:$0xff]  ;;  %v302_v20 = vld [vmem:[#allocation2 + $0x8] sm:$0xff] }
  0x1c   : > { %v301_v15 = vld [vmem:[#allocation2] sm:$0xff]  ;;  %v3295_v17 = vand.u32 4294901760, %v292_v14  ;;  %v3298_v19 = vand.u32 4294901760, %v299_v16  ;;  %v303_v21 = vld [vmem:[#allocation2 + $0x10] sm:$0xff]  ;;  %v317_v28 = vsel %vm312_vm1, %v302_v20, 0  ;;  %v304_v53 = vld [vmem:[#allocation2 + $0x18] sm:$0xff] }
  0x1d   : > { %v314_v18 = vsel %vm312_vm1, %v301_v15, 0  ;;  %350 = vmatpush.msra.mxu0 %v3288_v11  ;;  %v435_v22 = vsub.f32 %v295_v8, %v3288_v11  ;;  %569 = vmatpush.msra.mxu3 %v3288_v11  ;;  %v441_v23 = vsub.f32 %v294_v9, %v3290_v12  ;;  %v3305_v24 = vsub.f32 %v293_v10, %v3292_v13  ;;  %v298_v44 = vld [vmem:[%s3261_s9 + $0x10] sm:$0xff]  ;;  %v297_v58 = vld [vmem:[%s3261_s9 + $0x8] sm:$0xff]  ;;  %v305_v5 = vld [vmem:[#allocation2 + $0x20] sm:$0xff] }
  0x1e   : > { %v3307_v25 = vand.u32 4294901760, %v314_v18  ;;  %v3310_v26 = vsub.f32 %v292_v14, %v3295_v17  ;;  %v3313_v27 = vsub.f32 %v299_v16, %v3298_v19  ;;  %v320_v29 = vsel %vm312_vm1, %v303_v21, 0  ;;  %v296_v21 = vld [vmem:[%s3261_s9] sm:$0xff] }
  0x1f   : > { %505 = vmatpush.msra.mxu2 %v435_v22  ;;  %352 = vmatpush.msra.mxu0 %v3290_v12  ;;  %v436_v30 = vand.u32 4294901760, %v435_v22  ;;  %v442_v32 = vand.u32 4294901760, %v441_v23  ;;  %v448_v33 = vand.u32 4294901760, %v3305_v24  ;;  %v3325_v36 = vand.u32 4294901760, %v317_v28 }
  0x20   : > { %v358_v31 = vsub.f32 %v314_v18, %v3307_v25  ;;  %571 = vmatpush.msra.mxu3 %v3290_v12  ;;  %v3322_v34 = vand.u32 4294901760, %v3313_v27  ;;  %v454_v35 = vand.u32 4294901760, %v3310_v26  ;;  %v3333_v43 = vand.u32 4294901760, %v320_v29 }
  0x21   : > { %508 = vmatpush.msra.mxu2 %v441_v23  ;;  %354 = vmatpush.msra.mxu0 %v3292_v13  ;;  %v437_v37 = vsub.f32 %v435_v22, %v436_v30  ;;  %v443_v39 = vsub.f32 %v441_v23, %v442_v32  ;;  %v449_v41 = vsub.f32 %v3305_v24, %v448_v33  ;;  %v3343_v52 = vand.u32 4294901760, %v298_v44 }
  0x22   : > { %v359_v38 = vand.u32 4294901760, %v358_v31  ;;  %573 = vmatpush.msra.mxu3 %v3292_v13  ;;  %v786_v40 = vsub.f32 %v3313_v27, %v3322_v34  ;;  %v366_v42 = vsub.f32 %v317_v28, %v3325_v36  ;;  %v455_v49 = vsub.f32 %v3310_v26, %v454_v35 }
  0x23   : > { %511 = vmatpush.msra.mxu2 %v3305_v24  ;;  %356 = vmatpush.msra.mxu0 %v3295_v17  ;;  %v438_v45 = vand.u32 4294901760, %v437_v37  ;;  %v444_v47 = vand.u32 4294901760, %v443_v39  ;;  %v450_v54 = vand.u32 4294901760, %v449_v41  ;;  %v374_v55 = vsub.f32 %v320_v29, %v3333_v43  ;;  %v307_v29 = vld [vmem:[#allocation2 + $0x30] sm:$0xff] }
  0x24   : > { %v360_v46 = vsub.f32 %v358_v31, %v359_v38  ;;  %575 = vmatpush.msra.mxu3 %v3295_v17  ;;  %v3339_v48 = vand.u32 4294901760, %v786_v40  ;;  %v367_v50 = vand.u32 4294901760, %v366_v42  ;;  %v3348_v57 = vsub.f32 %v298_v44, %v3343_v52  ;;  %v308_v40 = vld [vmem:[#allocation2 + $0x38] sm:$0xff] }
  0x25   : > { %640 = vmatpush.msrb.mxu0 %v436_v30  ;;  %439 = vmatpush.msra.mxu1 %v438_v45  ;;  %v456_v59 = vand.u32 4294901760, %v455_v49  ;;  %v323_v60 = vsel %vm312_vm1, %v304_v53, 0  ;;  %v3357_v62 = vand.u32 4294901760, %v297_v58  ;;  %v375_v63 = vand.u32 4294901760, %v374_v55 }
  0x26   : > { %514 = vmatpush.msra.mxu2 %v3310_v26  ;;  %v361_v51 = vand.u32 4294901760, %v360_v46  ;;  %579 = vmatmul.f32.vlgmr.msra.gmra.mxu3 %v359_v38  ;;  %v368_v56 = vsub.f32 %v366_v42, %v367_v50  ;;  %v3355_v61 = vand.u32 4294901760, %v3348_v57  ;;  %v3361_v2 = vand.u32 4294901760, %v323_v60 }
  0x27   : > { %517 = vmatmul.f32.vlgmr.msra.gmra.mxu2 %v358_v31  ;;  %445 = vmatpush.msra.mxu1 %v444_v47  ;;  %v3365_v3 = vsub.f32 %v297_v58, %v3357_v62  ;;  %v376_v7 = vsub.f32 %v374_v55, %v375_v63  ;;  %v326_v10 = vsel %vm312_vm1, %v305_v5, 0  ;;  %v3394_v23 = vand.u32 4294901760, %v296_v21 }
  0x28   : > { %362 = vmatmul.f32.vlgmr.msra.gmra.mxu0 %v361_v51  ;;  %755 = vmatpush.msrb.mxu2 %v3298_v19  ;;  %v369_v0 = vand.u32 4294901760, %v368_v56  ;;  %v792_v1 = vsub.f32 %v3348_v57, %v3355_v61  ;;  %v382_v8 = vsub.f32 %v323_v60, %v3361_v2  ;;  %v3384_v18 = vand.u32 4294901760, %v326_v10 }
  0x29   : > { %788 = vmatpush.msrb.mxu3 %v3339_v48  ;;  %644 = vmatpush.msrb.mxu0 %v442_v32  ;;  %v3371_v6 = vand.u32 4294901760, %v3365_v3  ;;  %v377_v15 = vand.u32 4294901760, %v376_v7  ;;  %v335_v44 = vsel %vm312_vm1, %v308_v40, 0  ;;  %v3198_v56 = vmov 0.0  }
  0x2a   : > { %757 = vmatpush.msrb.mxu2 %v3343_v52  ;;  %451 = vmatpush.msra.mxu1 %v450_v54  ;;  %v3368_v4 = vand.u32 4294901760, %v792_v1  ;;  %v383_v16 = vand.u32 4294901760, %v382_v8  ;;  %v3431_v47 = vand.u32 4294901760, %v335_v44 }
  0x2b   : > { %648 = vmatpush.msrb.mxu0 %v448_v33  ;;  %v798_v9 = vsub.f32 %v3365_v3, %v3371_v6  ;;  %v332_v33 = vsel %vm312_vm1, %v307_v29, 0 }
  0x2c   : > { %759 = vmatpush.msrb.mxu2 %v3357_v62  ;;  %457 = vmatpush.msra.mxu1 %v456_v59  ;;  %v384_v20 = vsub.f32 %v382_v8, %v383_v16  ;;  %v3422_v39 = vand.u32 4294901760, %v332_v33 }
  0x2d   : > { %459 = vmatmul.f32.vlgmr.msra.gmra.mxu1 %v3307_v25  ;;  %652 = vmatpush.msrb.mxu0 %v454_v35  ;;  %v3380_v14 = vand.u32 4294901760, %v798_v9 }
  0x2e   : > { %585 = vmatmul.f32.gmra.mxu3 %v367_v50  ;;  %699 = vmatpush.msrb.mxu1 %v3288_v11  ;;  %v306_v11 = vld [vmem:[#allocation2 + $0x28] sm:$0xff]  ;;  %v385_v24 = vand.u32 4294901760, %v384_v20  ;;  %v414_v50 = vsub.f32 %v335_v44, %v3431_v47 }
  0x2f   : > { %522 = vmatmul.f32.gmra.mxu2 %v366_v42  ;;  %794 = vmatpush.msrb.mxu3 %v3368_v4  ;;  %v329_v22 = vsel %vm312_vm1, %v306_v11, 0  ;;  %v406_v42 = vsub.f32 %v332_v33, %v3422_v39 }
  0x30   : > { %370 = vmatmul.f32.gmra.mxu0 %v369_v0  ;;  %701 = vmatpush.msrb.mxu1 %v3290_v12  ;;  %v390_v12 = vsub.f32 %v326_v10, %v3384_v18  ;;  %v3402_v28 = vand.u32 4294901760, %v329_v22  ;;  %v415_v53 = vand.u32 4294901760, %v414_v50 }
  0x31   : > { %1344 = vmatpush.msra.mxu0 %v3322_v34  ;;  %800 = vmatpush.msrb.mxu3 %v3380_v14  ;;  %v407_v46 = vand.u32 4294901760, %v406_v42 }
  0x32   : > { %703 = vmatpush.msrb.mxu1 %v3292_v13  ;;  %761 = vmatpush.msrb.mxu2 %v3394_v23  ;;  %v3399_v13 = vsub.f32 %v296_v21, %v3394_v23  ;;  %v391_v26 = vand.u32 4294901760, %v390_v12  ;;  %v398_v32 = vsub.f32 %v329_v22, %v3402_v28  ;;  %v416_v54 = vsub.f32 %v414_v50, %v415_v53 }
  0x33   : > { %1348 = vmatpush.msra.mxu0 %v3355_v61  ;;  %v408_v49 = vsub.f32 %v406_v42, %v407_v46 }
  0x34   : > { %705 = vmatpush.msrb.mxu1 %v3295_v17  ;;  %826 = vmatpush.msra.mxu2 %v3313_v27  ;;  %v3406_v17 = vand.u32 4294901760, %v3399_v13  ;;  %v392_v31 = vsub.f32 %v390_v12, %v391_v26  ;;  %v399_v38 = vand.u32 4294901760, %v398_v32 }
  0x35   : > { %1352 = vmatpush.msra.mxu0 %v3371_v6  ;;  %463 = vmatmul.f32.gmra.mxu1 %v3325_v36  ;;  %v409_v51 = vand.u32 4294901760, %v408_v49 }
  0x36   : > { %591 = vmatmul.f32.gmra.mxu3 %v375_v63  ;;  %1375 = vmatpush.msra.mxu1 %v3298_v19  ;;  %v804_v30 = vsub.f32 %v3399_v13, %v3406_v17  ;;  %v393_v37 = vand.u32 4294901760, %v392_v31  ;;  %v400_v41 = vsub.f32 %v398_v32, %v399_v38 }
  0x37   : > { %527 = vmatmul.f32.gmra.mxu2 %v374_v55  ;;  %1356 = vmatpush.msra.mxu0 %v3406_v17  ;;  %v417_v55 = vand.u32 4294901760, %v416_v54 }
  0x38   : > { %378 = vmatmul.f32.gmra.mxu0 %v377_v15  ;;  %1377 = vmatpush.msra.mxu1 %v3343_v52  ;;  %v3416_v35 = vand.u32 4294901760, %v804_v30  ;;  %v401_v45 = vand.u32 4294901760, %v400_v41 }
  0x39   : > { %829 = vmatpush.msra.mxu2 %v3348_v57 }
  0x3a   : > { %1379 = vmatpush.msra.mxu1 %v3357_v62  ;;  %806 = vmatpush.msrb.mxu3 %v3416_v35 }
  0x3b   : > { %832 = vmatpush.msra.mxu2 %v3365_v3 }
  0x3c   : > { %1381 = vmatpush.msra.mxu1 %v3394_v23  ;;  %855 = vmatpush.msra.mxu3 %v3298_v19 }
  0x3d   : > { %467 = vmatmul.f32.gmra.mxu1 %v3333_v43  ;;  %835 = vmatpush.msra.mxu2 %v3399_v13 }
  0x3e   : > { %597 = vmatmul.f32.gmra.mxu3 %v383_v16 }
  0x3f   : > { %532 = vmatmul.f32.gmra.mxu2 %v382_v8  ;;  %857 = vmatpush.msra.mxu3 %v3343_v52 }
  0x40   : > { %386 = vmatmul.f32.gmra.mxu0 %v385_v24 }
  0x41   : > { %859 = vmatpush.msra.mxu3 %v3357_v62 }
  0x43   : > { %861 = vmatpush.msra.mxu3 %v3394_v23 }
  0x45   : > { %471 = vmatmul.f32.gmra.mxu1 %v3361_v2 }
  0x46   : > { %603 = vmatmul.f32.gmra.mxu3 %v391_v26 }
  0x47   : > { %537 = vmatmul.f32.gmra.mxu2 %v390_v12 }
  0x48   : > { %394 = vmatmul.f32.gmra.mxu0 %v393_v37 }
  0x4d   : > { %475 = vmatmul.f32.gmra.mxu1 %v3384_v18 }
  0x4e   : > { %609 = vmatmul.f32.gmra.mxu3 %v399_v38 }
  0x4f   : > { %542 = vmatmul.f32.gmra.mxu2 %v398_v32 }
  0x50   : > { %402 = vmatmul.f32.gmra.mxu0 %v401_v45 }
  0x55   : > { %479 = vmatmul.f32.gmra.mxu1 %v3402_v28 }
  0x56   : > { %615 = vmatmul.f32.gmra.mxu3 %v407_v46 }
  0x57   : > { %547 = vmatmul.f32.gmra.mxu2 %v406_v42 }
  0x58   : > { %410 = vmatmul.f32.gmra.mxu0 %v409_v51 }
  0x5d   : > { %483 = vmatmul.f32.gmra.mxu1 %v3422_v39 }
  0x5e   : > { %621 = vmatmul.f32.gmra.mxu3 %v415_v53 }
  0x5f   : > { %552 = vmatmul.f32.gmra.mxu2 %v414_v50 }
  0x60   : > { %418 = vmatmul.f32.gmra.mxu0 %v417_v55 }
  0x65   : > { %487 = vmatmul.f32.gmra.mxu1 %v3431_v47 }
  0x66   : > { %808 = vmatmul.f32.vlgmr.msrb.gmra.mxu3 %v3198_v56 }
  0x67   : > { %767 = vmatmul.f32.vlgmr.msrb.gmra.mxu2 %v3198_v56  ;;  %915 = vmatpush.msrb.mxu3 %v3298_v19 }
  0x68   : > { %654 = vmatmul.f32.vlgmr.msrb.gmra.mxu0 %v3307_v25  ;;  %884 = vmatpush.msrb.mxu2 %v3322_v34 }
  0x69   : > { %1516 = vmatpush.msrb.mxu0 %v3313_v27  ;;  %917 = vmatpush.msrb.mxu3 %v3343_v52 }
  0x6a   : > { %888 = vmatpush.msrb.mxu2 %v3355_v61 }
  0x6b   : > { %1519 = vmatpush.msrb.mxu0 %v3348_v57  ;;  %919 = vmatpush.msrb.mxu3 %v3357_v62 }
  0x6c   : > { %892 = vmatpush.msrb.mxu2 %v3371_v6 }
  0x6d   : > { %1522 = vmatpush.msrb.mxu0 %v3365_v3  ;;  %707 = vmatmul.f32.vlgmr.msrb.gmra.mxu1 %v3307_v25  ;;  %v3124_v25 = vld [vmem:[%s270_s27] ss:$0 sm:$0xff]  ;;  %s3200_s27 = smov 64  }
  0x6e   : > { %896 = vmatpush.msrb.mxu2 %v3406_v17  ;;  %865 = vmatmul.f32.vlgmr.msra.gmra.mxu3 %v3198_v56 }
  0x6f   : > { %838 = vmatmul.f32.vlgmr.msra.gmra.mxu2 %v3198_v56  ;;  %921 = vmatpush.msrb.mxu3 %v3394_v23 }
  0x70   : > { %658 = vmatmul.f32.gmra.mxu0 %v3325_v36  ;;  %985 = vmatpush.msra.mxu2 %v3298_v19 }
  0x71   : > { %1018 = vmatpush.msra.mxu3 %v3339_v48  ;;  %1545 = vmatpush.msrb.mxu1 %v3298_v19 }
  0x72   : > { %1525 = vmatpush.msrb.mxu0 %v3399_v13  ;;  %987 = vmatpush.msra.mxu2 %v3343_v52 }
  0x73   : > { %1024 = vmatpush.msra.mxu3 %v3368_v4  ;;  %1547 = vmatpush.msrb.mxu1 %v3343_v52 }
  0x74   : > { %989 = vmatpush.msra.mxu2 %v3357_v62 }
  0x75   : > { %1030 = vmatpush.msra.mxu3 %v3380_v14  ;;  %711 = vmatmul.f32.gmra.mxu1 %v3325_v36 }
  0x76   : > { %923 = vmatmul.f32.vlgmr.msrb.gmra.mxu3 %v3198_v56  ;;  %991 = vmatpush.msra.mxu2 %v3394_v23 }
  0x77   : > { %898 = vmatmul.f32.vlgmr.msrb.gmra.mxu2 %v3198_v56  ;;  %1036 = vmatpush.msra.mxu3 %v3416_v35 }
  0x78   : > { %662 = vmatmul.f32.gmra.mxu0 %v3333_v43  ;;  %1056 = vmatpush.msrb.mxu2 %v3313_v27 }
  0x79   : > { %1085 = vmatpush.msrb.mxu3 %v3298_v19  ;;  %1549 = vmatpush.msrb.mxu1 %v3357_v62 }
  0x7a   : > { %1059 = vmatpush.msrb.mxu2 %v3348_v57 }
  0x7b   : > { %1087 = vmatpush.msrb.mxu3 %v3343_v52  ;;  %1551 = vmatpush.msrb.mxu1 %v3394_v23 }
  0x7c   : > { %1062 = vmatpush.msrb.mxu2 %v3365_v3 }
  0x7d   : > { %1089 = vmatpush.msrb.mxu3 %v3357_v62  ;;  %715 = vmatmul.f32.gmra.mxu1 %v3333_v43 }
  0x7e   : > { %1065 = vmatpush.msrb.mxu2 %v3399_v13 }
  0x7f   : > { %1091 = vmatpush.msrb.mxu3 %v3394_v23 }
  0x80   : > { %666 = vmatmul.f32.gmra.mxu0 %v3361_v2 }
  0x85   : > { %719 = vmatmul.f32.gmra.mxu1 %v3361_v2 }
  0x88   : > { %670 = vmatmul.f32.gmra.mxu0 %v3384_v18 }
  0x8d   : > { %723 = vmatmul.f32.gmra.mxu1 %v3384_v18 }
  0x90   : > { %674 = vmatmul.f32.gmra.mxu0 %v3402_v28 }
  0x95   : > { %727 = vmatmul.f32.gmra.mxu1 %v3402_v28 }
  0x98   : > { %678 = vmatmul.f32.gmra.mxu0 %v3422_v39 }
  0x9d   : > { %731 = vmatmul.f32.gmra.mxu1 %v3422_v39 }
  0xa0   : > { %682 = vmatmul.f32.gmra.mxu0 %v3431_v47 }
  0xa5   : > { %v363_v36 = vpop.f32.mrf.mxu0  ;;  %735 = vmatmul.f32.gmra.mxu1 %v3431_v47 }
  0xa6   : > { %v364_v43 = vadd.f32 %v3124_v25, %v363_v36 }
  0xa9   : > { %v580_v59 = vpop.f32.mrf.mxu3 }
  0xaa   : > { %v518_v58 = vpop.f32.mrf.mxu2  ;;  %v460_v60 = vpop.f32.mrf.mxu1 }
  0xab   : > { %v461_v63 = vadd.f32 %v460_v60, %v364_v43 }
  0xad   : > { %v371_v0 = vpop.f32.mrf.mxu0  ;;  %v519_v1 = vadd.f32 %v518_v58, %v461_v63 }
  0xae   : > { %v372_v2 = vadd.f32 %v3124_v25, %v371_v0 }
  0xaf   : > { %v3491_v5 = vadd.f32 %v580_v59, %v519_v1 }
  0xb1   : > { %v586_v8 = vpop.f32.mrf.mxu3 }
  0xb2   : > { %v523_v7 = vpop.f32.mrf.mxu2  ;;  %v464_v9 = vpop.f32.mrf.mxu1 }
  0xb3   : > { %v465_v10 = vadd.f32 %v464_v9, %v372_v2 }
  0xb5   : > { %v379_v15 = vpop.f32.mrf.mxu0  ;;  %v524_v16 = vadd.f32 %v523_v7, %v465_v10 }
  0xb6   : > { %v380_v18 = vadd.f32 %v3124_v25, %v379_v15 }
  0xb7   : > { %v3493_v11 = vadd.f32 %v586_v8, %v524_v16 }
  0xb9   : > { %v592_v12 = vpop.f32.mrf.mxu3 }
  0xba   : > { %v528_v20 = vpop.f32.mrf.mxu2  ;;  %v468_v21 = vpop.f32.mrf.mxu1 }
  0xbb   : > { %v469_v22 = vadd.f32 %v468_v21, %v380_v18 }
  0xbd   : > { %v387_v24 = vpop.f32.mrf.mxu0  ;;  %v529_v26 = vadd.f32 %v528_v20, %v469_v22 }
  0xbe   : > { %v388_v28 = vadd.f32 %v3124_v25, %v387_v24 }
  0xbf   : > { %v3495_v29 = vadd.f32 %v592_v12, %v529_v26 }
  0xc1   : > { %v598_v31 = vpop.f32.mrf.mxu3 }
  0xc2   : > { %v533_v30 = vpop.f32.mrf.mxu2  ;;  %v472_v32 = vpop.f32.mrf.mxu1 }
  0xc3   : > { %v473_v33 = vadd.f32 %v472_v32, %v388_v28 }
  0xc5   : > { %v395_v37 = vpop.f32.mrf.mxu0  ;;  %v534_v38 = vadd.f32 %v533_v30, %v473_v33 }
  0xc6   : > { %v396_v39 = vadd.f32 %v3124_v25, %v395_v37 }
  0xc7   : > { %v599_v40 = vadd.f32 %v598_v31, %v534_v38 }
  0xc9   : > { %v604_v42 = vpop.f32.mrf.mxu3 }
  0xca   : > { %v538_v41 = vpop.f32.mrf.mxu2  ;;  %v476_v44 = vpop.f32.mrf.mxu1 }
  0xcb   : > { %v477_v45 = vadd.f32 %v476_v44, %v396_v39 }
  0xcd   : > { %v403_v46 = vpop.f32.mrf.mxu0  ;;  %v539_v47 = vadd.f32 %v538_v41, %v477_v45 }
  0xce   : > { %v404_v49 = vadd.f32 %v3124_v25, %v403_v46 }
  0xcf   : > { %v605_v50 = vadd.f32 %v604_v42, %v539_v47 }
  0xd1   : > { %v610_v53 = vpop.f32.mrf.mxu3 }
  0xd2   : > { %v543_v51 = vpop.f32.mrf.mxu2  ;;  %v480_v54 = vpop.f32.mrf.mxu1 }
  0xd3   : > { %v481_v55 = vadd.f32 %v480_v54, %v404_v49 }
  0xd5   : > { %v411_v56 = vpop.f32.mrf.mxu0  ;;  %v544_v36 = vadd.f32 %v543_v51, %v481_v55 }
  0xd6   : > { %v412_v43 = vadd.f32 %v3124_v25, %v411_v56 }
  0xd7   : > { %v611_v58 = vadd.f32 %v610_v53, %v544_v36 }
  0xd9   : > { %v616_v60 = vpop.f32.mrf.mxu3 }
  0xda   : > { %v548_v59 = vpop.f32.mrf.mxu2  ;;  %v484_v63 = vpop.f32.mrf.mxu1 }
  0xdb   : > { %v485_v0 = vadd.f32 %v484_v63, %v412_v43 }
  0xdd   : > { %v419_v1 = vpop.f32.mrf.mxu0  ;;  %v549_v2 = vadd.f32 %v548_v59, %v485_v0 }
  0xde   : > { %v420_v7 = vadd.f32 %v3124_v25, %v419_v1 }
  0xdf   : > { %v617_v8 = vadd.f32 %v616_v60, %v549_v2 }
  0xe1   : > { %v622_v10 = vpop.f32.mrf.mxu3 }
  0xe2   : > { %v553_v9 = vpop.f32.mrf.mxu2  ;;  %v488_v15 = vpop.f32.mrf.mxu1 }
  0xe3   : > { %v489_v16 = vadd.f32 %v488_v15, %v420_v7 }
  0xe5   : > { %v655_v18 = vpop.f32.mrf.mxu0  ;;  %v554_v20 = vadd.f32 %v553_v9, %v489_v16 }
  0xe6   : > { %v656_v41 = vadd.f32 %v655_v18, %v3491_v5 }
  0xe7   : > { %v3497_v12 = vadd.f32 %v622_v10, %v554_v20 }
  0xe9   : > { %v809_v22 = vpop.f32.mrf.mxu3 }
  0xea   : > { %v768_v21 = vpop.f32.mrf.mxu2  ;;  %v708_v24 = vpop.f32.mrf.mxu1 }
  0xeb   : > { %v810_v31 = vadd.f32 %v809_v22, %v768_v21  ;;  %v709_v45 = vadd.f32 %v708_v24, %v656_v41 }
  0xed   : > { %v3499_v26 = vpop.f32.mrf.mxu0 }
  0xf1   : > { %v866_v30 = vpop.f32.mrf.mxu3 }
  0xf2   : > { %v839_v28 = vpop.f32.mrf.mxu2  ;;  %v3501_v32 = vpop.f32.mrf.mxu1 }
  0xf3   : > { %v840_v25 = vadd.f32 %v839_v28, %v810_v31 }
  0xf5   : > { %v3503_v33 = vpop.f32.mrf.mxu0  ;;  %v867_v37 = vadd.f32 %v866_v30, %v840_v25 }
  0xf9   : > { %v924_v39 = vpop.f32.mrf.mxu3 }
  0xfa   : > { %v899_v38 = vpop.f32.mrf.mxu2  ;;  %v3506_v42 = vpop.f32.mrf.mxu1 }
  0xfb   : > { %v900_v44 = vadd.f32 %v899_v38, %v867_v37 }
  0xfd   : > { %v667_v46 = vpop.f32.mrf.mxu0  ;;  %v925_v47 = vadd.f32 %v924_v39, %v900_v44 }
  0xfe   : > { %v668_v49 = vadd.f32 %v667_v46, %v599_v40 }
  0xff   : > { %v927_v51 = vadd.f32 %v925_v47, %v709_v45 }
 0x101   : > { %3125 = vtanh.f32 %v927_v51  ;;  %v3092_v9 = vmul.f32 -1.442695, %v927_v51 }
 0x102   : > { %v720_v53 = vpop.f32.mrf.mxu1 }
 0x103   : > { %v3508_v54 = vadd.f32 %v720_v53, %v668_v49  ;;  %3127 = vpow2.f32 %v3092_v9 }
 0x105   : > { %v671_v55 = vpop.f32.mrf.mxu0 }
 0x106   : > { %v672_v56 = vadd.f32 %v671_v55, %v605_v50 }
 0x107   : > { %v3126_v36 = vpop.eup %3125 }
 0x108   : > { %950 = vrot.lane.b32.xlu0 %v3126_v36, %s3199_s23 }
 0x109   : > { %v3128_v50 = vpop.eup %3127 }
 0x10a   : > { %v724_v43 = vpop.f32.mrf.mxu1  ;;  %v931_v10 = vadd.f32 1.0, %v3128_v50 }
 0x10b   : > { %v3511_v5 = vadd.f32 %v724_v43, %v672_v56 }
 0x10c   : > { %3129 = vrcp.f32 %v931_v10  ;;  %vm937_vm3 = vweird.f32 %v931_v10  ;;  %v941_v22 = vand.u32 2147483647, %v931_v10 }
 0x10d   : > { %v675_v59 = vpop.f32.mrf.mxu0 }
 0x10e   : > { %v676_v60 = vadd.f32 %v675_v59, %v611_v58  ;;  %v943_v58 = vand.u32 2147483648, %v931_v10  ;;  %vm942_vm5 = vcmp.eq.f32.partialorder %v941_v22, 8.507059e+37 }
 0x112   : > { %v728_v63 = vpop.f32.mrf.mxu1  ;;  %v3130_v15 = vpop.eup %3129 }
 0x113   : > { %v3513_v0 = vadd.f32 %v728_v63, %v676_v60  ;;  %v933_v16 = vmul.f32 %v3130_v15, %v931_v10  ;;  %vm938_vm2 = vweird.f32 %v3130_v15 }
 0x114   : > { %vm939_vm4 = vmor %vm937_vm3, %vm938_vm2 }
 0x115   : > { %v679_v40 = vpop.f32.mrf.mxu0  ;;  %v934_v18 = vsub.f32 1.0, %v933_v16 }
 0x116   : > { %v680_v1 = vadd.f32 %v679_v40, %v617_v8  ;;  %v944_v8 = vor.u32 1.1754944e-38, %v943_v58 }
 0x117   : > { %v935_v20 = vmul.f32 %v3130_v15, %v934_v18 }
 0x119   : > { %v936_v21 = vadd.f32 %v3130_v15, %v935_v20 }
 0x11a   : > { %v732_v2 = vpop.f32.mrf.mxu1 }
 0x11b   : > { %v3515_v7 = vadd.f32 %v732_v2, %v680_v1  ;;  %v940_v24 = vsel %vm939_vm4, %v3130_v15, %v936_v21  ;;  %v660_v2 = vadd.f32 %v3499_v26, %v3493_v11 }
 0x11c   : > { %v945_v30 = vsel %vm942_vm5, %v944_v8, %v940_v24 }
 0x11d   : > { %v948_v25 = vmul.f32 0.0, %v945_v30  ;;  %v713_v10 = vadd.f32 %v3501_v32, %v660_v2 }
 0x17a   : > { %v951_v28 = vpop.permute.xlu0 %950 }
 0x17b   : > { %v953_v31 = vmul.f32 %v951_v28, %v945_v30 }
 0x17d   : > { %955 = vrot.lane.b32.xlu0 %v953_v31, %s3199_s23 }
 0x1ef   : > { %v956_v37 = vpop.permute.xlu0 %955 }
 0x1f0   : > { %v3518_v38 = vadd.f32 %v956_v37, %v948_v25 }
 0x1f2   : > { %3131 = vtanh.f32 %v3518_v38 }
 0x1f8   : > { %v3132_v39 = vpop.eup %3131 }
 0x1f9   : > { %961 = vrot.lane.b32.xlu1 %v3132_v39, %s3199_s23 }
 0x26b   : > { %v962_v41 = vpop.permute.xlu1 %961 }
 0x26c   : > { %v964_v44 = vmul.f32 %v962_v41, %v945_v30 }
 0x26e   : > { %966 = vrot.lane.b32.xlu1 %v964_v44, %s3200_s27 }
 0x2e0   : > { %v967_v45 = vpop.permute.xlu1 %966 }
 0x2e1   : > { %969 = vst.msk [vmem:[#allocation2] sm:$0xff] %vm312_vm1, %v967_v45  ;;  %v970_v46 = vsel %vm312_vm1, %v967_v45, 0 }
 0x2e2   : > { %v992_v47 = vand.u32 4294901760, %v970_v46 }
 0x2e4   : > { %v993_v49 = vsub.f32 %v970_v46, %v992_v47  ;;  %1038 = vmatmul.f32.vlgmr.msra.gmra.mxu3 %v992_v47 }
 0x2e5   : > { %1145 = vmatpush.msra.mxu3 %v3298_v19 }
 0x2e6   : > { %v994_v51 = vand.u32 4294901760, %v993_v49 }
 0x2e7   : > { %1147 = vmatpush.msra.mxu3 %v3343_v52 }
 0x2e8   : > { %v995_v53 = vsub.f32 %v993_v49, %v994_v51 }
 0x2e9   : > { %1149 = vmatpush.msra.mxu3 %v3357_v62 }
 0x2ea   : > { %v996_v55 = vand.u32 4294901760, %v995_v53 }
 0x2eb   : > { %1151 = vmatpush.msra.mxu3 %v3394_v23 }
 0x2ec   : > { %997 = vmatmul.f32.vlgmr.msra.gmra.mxu2 %v996_v55  ;;  %1095 = vmatmul.f32.vlgmr.msrb.gmra.mxu3 %v994_v51 }
 0x2ed   : > { %1114 = vmatpush.msra.mxu2 %v3322_v34  ;;  %1248 = vmatpush.msrb.mxu3 %v3339_v48 }
 0x2ef   : > { %1118 = vmatpush.msra.mxu2 %v3355_v61  ;;  %1254 = vmatpush.msrb.mxu3 %v3368_v4 }
 0x2f1   : > { %1122 = vmatpush.msra.mxu2 %v3371_v6  ;;  %1260 = vmatpush.msrb.mxu3 %v3380_v14 }
 0x2f3   : > { %1126 = vmatpush.msra.mxu2 %v3406_v17  ;;  %1266 = vmatpush.msrb.mxu3 %v3416_v35 }
 0x2f4   : > { %1068 = vmatmul.f32.vlgmr.msrb.gmra.mxu2 %v993_v49  ;;  %1153 = vmatmul.f32.vlgmr.msra.gmra.mxu3 %v992_v47 }
 0x2f5   : > { %1215 = vmatpush.msrb.mxu2 %v3298_v19  ;;  %1315 = vmatpush.msra.mxu3 %v3298_v19 }
 0x2f7   : > { %1217 = vmatpush.msrb.mxu2 %v3343_v52  ;;  %1317 = vmatpush.msra.mxu3 %v3343_v52 }
 0x2f9   : > { %1219 = vmatpush.msrb.mxu2 %v3357_v62  ;;  %1319 = vmatpush.msra.mxu3 %v3357_v62 }
 0x2fb   : > { %1221 = vmatpush.msrb.mxu2 %v3394_v23  ;;  %1321 = vmatpush.msra.mxu3 %v3394_v23 }
 0x2fc   : > { %1128 = vmatmul.f32.vlgmr.msra.gmra.mxu2 %v992_v47 }
 0x2fd   : > { %1286 = vmatpush.msra.mxu2 %v3313_v27 }
 0x2ff   : > { %1289 = vmatpush.msra.mxu2 %v3348_v57 }
 0x301   : > { %1292 = vmatpush.msra.mxu2 %v3365_v3 }
 0x303   : > { %1295 = vmatpush.msra.mxu2 %v3399_v13 }
 0x367   : > { %v1039_v56 = vpop.f32.mrf.mxu3 }
 0x36f   : > { %v998_v36 = vpop.f32.mrf.mxu2  ;;  %v1096_v43 = vpop.f32.mrf.mxu3 }
 0x370   : > { %v1040_v60 = vadd.f32 %v1039_v56, %v998_v36 }
 0x377   : > { %v1069_v59 = vpop.f32.mrf.mxu2  ;;  %v1154_v50 = vpop.f32.mrf.mxu3 }
 0x378   : > { %v1070_v63 = vadd.f32 %v1069_v59, %v1040_v60 }
 0x37a   : > { %v1097_v40 = vadd.f32 %v1096_v43, %v1070_v63  ;;  %v3586_v63 = vpop.f32.mrf.mxu0 }
 0x37f   : > { %v1129_v1 = vpop.f32.mrf.mxu2 }
 0x380   : > { %v1130_v9 = vadd.f32 %v1129_v1, %v1097_v40  ;;  %v3588_v40 = vpop.f32.mrf.mxu1 }
 0x382   : > { %v1155_v15 = vadd.f32 %v1154_v50, %v1130_v9 }
 0x384   : > { %v1157_v16 = vadd.f32 %v1155_v15, %v713_v10 }
 0x386   : > { %3133 = vtanh.f32 %v1157_v16  ;;  %v3093_v20 = vmul.f32 -1.442695, %v1157_v16  ;;  %v664_v16 = vadd.f32 %v3503_v33, %v3495_v29 }
 0x388   : > { %3135 = vpow2.f32 %v3093_v20 }
 0x38c   : > { %v3134_v18 = vpop.eup %3133 }
 0x38d   : > { %1180 = vrot.lane.b32.xlu2 %v3134_v18, %s3199_s23 }
 0x38e   : > { %v3136_v21 = vpop.eup %3135 }
 0x38f   : > { %v1161_v58 = vadd.f32 1.0, %v3136_v21  ;;  %v717_v21 = vadd.f32 %v3506_v42, %v664_v16 }
 0x391   : > { %3137 = vrcp.f32 %v1161_v58  ;;  %v1173_v26 = vand.u32 2147483648, %v1161_v58  ;;  %vm1167_vm7 = vweird.f32 %v1161_v58  ;;  %v1171_v32 = vand.u32 2147483647, %v1161_v58 }
 0x393   : > { %v1174_v31 = vor.u32 1.1754944e-38, %v1173_v26  ;;  %vm1172_vm9 = vcmp.eq.f32.partialorder %v1171_v32, 8.507059e+37 }
 0x397   : > { %v3138_v22 = vpop.eup %3137 }
 0x398   : > { %v1163_v24 = vmul.f32 %v3138_v22, %v1161_v58  ;;  %vm1168_vm6 = vweird.f32 %v3138_v22 }
 0x399   : > { %vm1169_vm8 = vmor %vm1167_vm7, %vm1168_vm6 }
 0x39a   : > { %v1164_v8 = vsub.f32 1.0, %v1163_v24 }
 0x39c   : > { %v1165_v28 = vmul.f32 %v3138_v22, %v1164_v8 }
 0x39e   : > { %v1166_v11 = vadd.f32 %v3138_v22, %v1165_v28 }
 0x3a0   : > { %v1170_v30 = vsel %vm1169_vm8, %v3138_v22, %v1166_v11 }
 0x3a1   : > { %v1175_v37 = vsel %vm1172_vm9, %v1174_v31, %v1170_v30 }
 0x3a2   : > { %v1178_v41 = vmul.f32 %v1175_v37, %v3518_v38 }
 0x3e7   : > { %v1181_v25 = vpop.permute.xlu2 %1180 }
 0x3e8   : > { %v1183_v39 = vmul.f32 %v1181_v25, %v1175_v37 }
 0x3ea   : > { %1185 = vrot.lane.b32.xlu2 %v1183_v39, %s3199_s23 }
 0x444   : > { %v1186_v44 = vpop.permute.xlu2 %1185 }
 0x445   : > { %v3555_v45 = vadd.f32 %v1186_v44, %v1178_v41 }
 0x447   : > { %3139 = vtanh.f32 %v3555_v45 }
 0x44d   : > { %v3140_v46 = vpop.eup %3139 }
 0x44e   : > { %1191 = vrot.lane.b32.xlu0 %v3140_v46, %s3199_s23 }
 0x4c0   : > { %v1192_v47 = vpop.permute.xlu0 %1191 }
 0x4c1   : > { %v1194_v49 = vmul.f32 %v1192_v47, %v1175_v37 }
 0x4c3   : > { %1196 = vrot.lane.b32.xlu1 %v1194_v49, %s3200_s27 }
 0x535   : > { %v1197_v51 = vpop.permute.xlu1 %1196 }
 0x536   : > { %1199 = vst.msk [vmem:[#allocation2 + $0x8] sm:$0xff] %vm312_vm1, %v1197_v51  ;;  %v1200_v53 = vsel %vm312_vm1, %v1197_v51, 0 }
 0x537   : > { %v1222_v55 = vand.u32 4294901760, %v1200_v53 }
 0x539   : > { %v1223_v56 = vsub.f32 %v1200_v53, %v1222_v55  ;;  %1268 = vmatmul.f32.vlgmr.msrb.gmra.mxu3 %v1222_v55  ;;  %1358 = vmatmul.f32.vlgmr.msra.gmra.mxu0 %v1222_v55 }
 0x53a   : > { %1383 = vmatmul.f32.vlgmr.msra.gmra.mxu1 %v1222_v55  ;;  %1478 = vmatpush.msrb.mxu3 %v3339_v48 }
 0x53b   : > { %v1224_v38 = vand.u32 4294901760, %v1223_v56  ;;  %1708 = vmatpush.msra.mxu1 %v3339_v48  ;;  %1675 = vmatpush.msra.mxu0 %v3298_v19 }
 0x53c   : > { %1484 = vmatpush.msrb.mxu3 %v3368_v4 }
 0x53d   : > { %v1225_v36 = vsub.f32 %v1223_v56, %v1224_v38  ;;  %1714 = vmatpush.msra.mxu1 %v3368_v4  ;;  %1677 = vmatpush.msra.mxu0 %v3343_v52 }
 0x53e   : > { %1490 = vmatpush.msrb.mxu3 %v3380_v14 }
 0x53f   : > { %v1226_v43 = vand.u32 4294901760, %v1225_v36  ;;  %1720 = vmatpush.msra.mxu1 %v3380_v14  ;;  %1679 = vmatpush.msra.mxu0 %v3357_v62 }
 0x540   : > { %1496 = vmatpush.msrb.mxu3 %v3416_v35 }
 0x541   : > { %1227 = vmatmul.f32.vlgmr.msrb.gmra.mxu2 %v1226_v43  ;;  %1325 = vmatmul.f32.vlgmr.msra.gmra.mxu3 %v1224_v38 }
 0x542   : > { %1445 = vmatpush.msrb.mxu2 %v3298_v19  ;;  %1605 = vmatpush.msra.mxu3 %v3298_v19 }
 0x543   : > { %1726 = vmatpush.msra.mxu1 %v3416_v35  ;;  %1681 = vmatpush.msra.mxu0 %v3394_v23 }
 0x544   : > { %1447 = vmatpush.msrb.mxu2 %v3343_v52  ;;  %1607 = vmatpush.msra.mxu3 %v3343_v52 }
 0x546   : > { %1449 = vmatpush.msrb.mxu2 %v3357_v62  ;;  %1609 = vmatpush.msra.mxu3 %v3357_v62 }
 0x548   : > { %1451 = vmatpush.msrb.mxu2 %v3394_v23  ;;  %1611 = vmatpush.msra.mxu3 %v3394_v23 }
 0x549   : > { %1298 = vmatmul.f32.vlgmr.msra.gmra.mxu2 %v1223_v56 }
 0x54a   : > { %1574 = vmatpush.msra.mxu2 %v3322_v34 }
 0x54c   : > { %1578 = vmatpush.msra.mxu2 %v3355_v61 }
 0x54e   : > { %1582 = vmatpush.msra.mxu2 %v3371_v6 }
 0x550   : > { %1586 = vmatpush.msra.mxu2 %v3406_v17 }
 0x5b6   : > { %v1359_v15 = vpop.f32.mrf.mxu0 }
 0x5b7   : > { %v1384_v20 = vpop.f32.mrf.mxu1 }
 0x5bc   : > { %v1269_v59 = vpop.f32.mrf.mxu3 }
 0x5c4   : > { %v1228_v60 = vpop.f32.mrf.mxu2  ;;  %v1326_v50 = vpop.f32.mrf.mxu3 }
 0x5c5   : > { %v1270_v1 = vadd.f32 %v1269_v59, %v1228_v60 }
 0x5cc   : > { %v1299_v2 = vpop.f32.mrf.mxu2 }
 0x5cd   : > { %v1300_v9 = vadd.f32 %v1299_v2, %v1270_v1 }
 0x5cf   : > { %v1327_v10 = vadd.f32 %v1326_v50, %v1300_v9 }
 0x5d1   : > { %v1360_v18 = vadd.f32 %v1359_v15, %v1327_v10 }
 0x5d3   : > { %v1385_v58 = vadd.f32 %v1384_v20, %v1360_v18 }
 0x5d5   : > { %v1387_v22 = vadd.f32 %v1385_v58, %v717_v21 }
 0x5d7   : > { %3141 = vtanh.f32 %v1387_v22  ;;  %v3094_v8 = vmul.f32 -1.442695, %v1387_v22 }
 0x5d9   : > { %3143 = vpow2.f32 %v3094_v8 }
 0x5dd   : > { %v3142_v24 = vpop.eup %3141 }
 0x5de   : > { %1410 = vrot.lane.b32.xlu2 %v3142_v24, %s3199_s23 }
 0x5df   : > { %v3144_v28 = vpop.eup %3143 }
 0x5e0   : > { %v1391_v11 = vadd.f32 1.0, %v3144_v28 }
 0x5e2   : > { %3145 = vrcp.f32 %v1391_v11  ;;  %v1403_v33 = vand.u32 2147483648, %v1391_v11  ;;  %vm1397_vm11 = vweird.f32 %v1391_v11  ;;  %v1401_v42 = vand.u32 2147483647, %v1391_v11 }
 0x5e4   : > { %v1404_v37 = vor.u32 1.1754944e-38, %v1403_v33  ;;  %vm1402_vm13 = vcmp.eq.f32.partialorder %v1401_v42, 8.507059e+37 }
 0x5e8   : > { %v3146_v26 = vpop.eup %3145 }
 0x5e9   : > { %v1393_v32 = vmul.f32 %v3146_v26, %v1391_v11  ;;  %vm1398_vm10 = vweird.f32 %v3146_v26 }
 0x5ea   : > { %vm1399_vm12 = vmor %vm1397_vm11, %vm1398_vm10 }
 0x5eb   : > { %v1394_v30 = vsub.f32 1.0, %v1393_v32 }
 0x5ed   : > { %v1395_v31 = vmul.f32 %v3146_v26, %v1394_v30 }
 0x5ef   : > { %v1396_v29 = vadd.f32 %v3146_v26, %v1395_v31 }
 0x5f1   : > { %v1400_v25 = vsel %vm1399_vm12, %v3146_v26, %v1396_v29 }
 0x5f2   : > { %v1405_v41 = vsel %vm1402_vm13, %v1404_v37, %v1400_v25 }
 0x5f3   : > { %v1408_v46 = vmul.f32 %v1405_v41, %v3555_v45 }
 0x638   : > { %v1411_v39 = vpop.permute.xlu2 %1410 }
 0x639   : > { %v1413_v44 = vmul.f32 %v1411_v39, %v1405_v41 }
 0x63b   : > { %1415 = vrot.lane.b32.xlu0 %v1413_v44, %s3199_s23 }
 0x6ad   : > { %v1416_v47 = vpop.permute.xlu0 %1415 }
 0x6ae   : > { %v3596_v49 = vadd.f32 %v1416_v47, %v1408_v46 }
 0x6b0   : > { %3147 = vtanh.f32 %v3596_v49 }
 0x6b6   : > { %v3148_v51 = vpop.eup %3147 }
 0x6b7   : > { %1421 = vrot.lane.b32.xlu1 %v3148_v51, %s3199_s23 }
 0x729   : > { %v1422_v53 = vpop.permute.xlu1 %1421 }
 0x72a   : > { %v1424_v55 = vmul.f32 %v1422_v53, %v1405_v41 }
 0x72c   : > { %1426 = vrot.lane.b32.xlu2 %v1424_v55, %s3200_s27 }
 0x786   : > { %v1427_v56 = vpop.permute.xlu2 %1426 }
 0x787   : > { %1429 = vst.msk [vmem:[#allocation2 + $0x10] sm:$0xff] %vm312_vm1, %v1427_v56  ;;  %v1430_v38 = vsel %vm312_vm1, %v1427_v56, 0 }
 0x788   : > { %v1452_v36 = vand.u32 4294901760, %v1430_v38 }
 0x78a   : > { %v1453_v43 = vsub.f32 %v1430_v38, %v1452_v36  ;;  %1498 = vmatmul.f32.vlgmr.msrb.gmra.mxu3 %v1452_v36 }
 0x78b   : > { %1775 = vmatpush.msrb.mxu3 %v3298_v19 }
 0x78c   : > { %v1454_v45 = vand.u32 4294901760, %v1453_v43  ;;  %1528 = vmatmul.f32.vlgmr.msrb.gmra.mxu0 %v1453_v43 }
 0x78d   : > { %1777 = vmatpush.msrb.mxu3 %v3343_v52  ;;  %1804 = vmatpush.msrb.mxu0 %v3322_v34 }
 0x78e   : > { %v1455_v59 = vsub.f32 %v1453_v43, %v1454_v45  ;;  %1555 = vmatmul.f32.vlgmr.msrb.gmra.mxu1 %v1454_v45 }
 0x78f   : > { %1779 = vmatpush.msrb.mxu3 %v3357_v62  ;;  %1835 = vmatpush.msrb.mxu1 %v3298_v19 }
 0x790   : > { %v1456_v60 = vand.u32 4294901760, %v1455_v59  ;;  %1808 = vmatpush.msrb.mxu0 %v3355_v61 }
 0x791   : > { %1781 = vmatpush.msrb.mxu3 %v3394_v23  ;;  %1837 = vmatpush.msrb.mxu1 %v3343_v52 }
 0x792   : > { %1457 = vmatmul.f32.vlgmr.msrb.gmra.mxu2 %v1456_v60  ;;  %1613 = vmatmul.f32.vlgmr.msra.gmra.mxu3 %v1452_v36 }
 0x793   : > { %1746 = vmatpush.msrb.mxu2 %v3313_v27  ;;  %1839 = vmatpush.msrb.mxu1 %v3357_v62 }
 0x794   : > { %1812 = vmatpush.msrb.mxu0 %v3371_v6  ;;  %1938 = vmatpush.msra.mxu3 %v3339_v48 }
 0x795   : > { %1749 = vmatpush.msrb.mxu2 %v3348_v57  ;;  %1841 = vmatpush.msrb.mxu1 %v3394_v23 }
 0x796   : > { %1816 = vmatpush.msrb.mxu0 %v3406_v17  ;;  %1944 = vmatpush.msra.mxu3 %v3368_v4 }
 0x797   : > { %1752 = vmatpush.msrb.mxu2 %v3365_v3 }
 0x798   : > { %1950 = vmatpush.msra.mxu3 %v3380_v14 }
 0x799   : > { %1755 = vmatpush.msrb.mxu2 %v3399_v13 }
 0x79a   : > { %1588 = vmatmul.f32.vlgmr.msra.gmra.mxu2 %v1452_v36  ;;  %1956 = vmatpush.msra.mxu3 %v3416_v35 }
 0x79b   : > { %1905 = vmatpush.msra.mxu2 %v3298_v19 }
 0x79d   : > { %1907 = vmatpush.msra.mxu2 %v3343_v52 }
 0x79f   : > { %1909 = vmatpush.msra.mxu2 %v3357_v62 }
 0x7a1   : > { %1911 = vmatpush.msra.mxu2 %v3394_v23 }
 0x809   : > { %v1529_v50 = vpop.f32.mrf.mxu0 }
 0x80b   : > { %v1556_v15 = vpop.f32.mrf.mxu1 }
 0x80d   : > { %v1499_v1 = vpop.f32.mrf.mxu3 }
 0x815   : > { %v1458_v2 = vpop.f32.mrf.mxu2  ;;  %v1614_v21 = vpop.f32.mrf.mxu3 }
 0x816   : > { %v1500_v9 = vadd.f32 %v1499_v1, %v1458_v2 }
 0x818   : > { %v1530_v10 = vadd.f32 %v1529_v50, %v1500_v9 }
 0x81a   : > { %v1557_v16 = vadd.f32 %v1556_v15, %v1530_v10 }
 0x81d   : > { %v1589_v18 = vpop.f32.mrf.mxu2 }
 0x81e   : > { %v1590_v20 = vadd.f32 %v1589_v18, %v1557_v16 }
 0x820   : > { %v1615_v58 = vadd.f32 %v1614_v21, %v1590_v20 }
 0x822   : > { %v1617_v22 = vadd.f32 %v1615_v58, %v3508_v54 }
 0x824   : > { %3149 = vtanh.f32 %v1617_v22  ;;  %v3095_v8 = vmul.f32 -1.442695, %v1617_v22 }
 0x826   : > { %3151 = vpow2.f32 %v3095_v8 }
 0x82a   : > { %v3150_v24 = vpop.eup %3149 }
 0x82b   : > { %1640 = vrot.lane.b32.xlu0 %v3150_v24, %s3199_s23 }
 0x82c   : > { %v3152_v28 = vpop.eup %3151 }
 0x82d   : > { %v1621_v11 = vadd.f32 1.0, %v3152_v28 }
 0x82f   : > { %3153 = vrcp.f32 %v1621_v11  ;;  %v1633_v33 = vand.u32 2147483648, %v1621_v11  ;;  %vm1627_vm15 = vweird.f32 %v1621_v11  ;;  %v1631_v42 = vand.u32 2147483647, %v1621_v11 }
 0x831   : > { %v1634_v25 = vor.u32 1.1754944e-38, %v1633_v33  ;;  %vm1632_vm2 = vcmp.eq.f32.partialorder %v1631_v42, 8.507059e+37 }
 0x835   : > { %v3154_v26 = vpop.eup %3153 }
 0x836   : > { %v1623_v32 = vmul.f32 %v3154_v26, %v1621_v11  ;;  %vm1628_vm14 = vweird.f32 %v3154_v26 }
 0x837   : > { %vm1629_vm0 = vmor %vm1627_vm15, %vm1628_vm14 }
 0x838   : > { %v1624_v30 = vsub.f32 1.0, %v1623_v32 }
 0x83a   : > { %v1625_v31 = vmul.f32 %v3154_v26, %v1624_v30 }
 0x83c   : > { %v1626_v29 = vadd.f32 %v3154_v26, %v1625_v31 }
 0x83e   : > { %v1630_v54 = vsel %vm1629_vm0, %v3154_v26, %v1626_v29 }
 0x83f   : > { %v1635_v39 = vsel %vm1632_vm2, %v1634_v25, %v1630_v54 }
 0x840   : > { %v1638_v44 = vmul.f32 %v1635_v39, %v3596_v49 }
 0x89d   : > { %v1641_v37 = vpop.permute.xlu0 %1640 }
 0x89e   : > { %v1643_v41 = vmul.f32 %v1641_v37, %v1635_v39 }
 0x8a0   : > { %1645 = vrot.lane.b32.xlu1 %v1643_v41, %s3199_s23 }
 0x912   : > { %v1646_v46 = vpop.permute.xlu1 %1645 }
 0x913   : > { %v3631_v47 = vadd.f32 %v1646_v46, %v1638_v44 }
 0x915   : > { %3155 = vtanh.f32 %v3631_v47 }
 0x91b   : > { %v3156_v51 = vpop.eup %3155 }
 0x91c   : > { %1651 = vrot.lane.b32.xlu2 %v3156_v51, %s3199_s23 }
 0x976   : > { %v1652_v53 = vpop.permute.xlu2 %1651 }
 0x977   : > { %v1654_v55 = vmul.f32 %v1652_v53, %v1635_v39 }
 0x979   : > { %1656 = vrot.lane.b32.xlu0 %v1654_v55, %s3200_s27 }
 0x9eb   : > { %v1657_v56 = vpop.permute.xlu0 %1656 }
 0x9ec   : > { %1659 = vst.msk [vmem:[#allocation2 + $0x18] sm:$0xff] %vm312_vm1, %v1657_v56  ;;  %v1660_v38 = vsel %vm312_vm1, %v1657_v56, 0 }
 0x9ed   : > { %v1682_v36 = vand.u32 4294901760, %v1660_v38 }
 0x9ef   : > { %v1683_v43 = vsub.f32 %v1660_v38, %v1682_v36  ;;  %1728 = vmatmul.f32.vlgmr.msra.gmra.mxu1 %v1682_v36 }
 0x9f0   : > { %2005 = vmatpush.msra.mxu1 %v3298_v19 }
 0x9f1   : > { %v1684_v49 = vand.u32 4294901760, %v1683_v43  ;;  %1758 = vmatmul.f32.vlgmr.msrb.gmra.mxu2 %v1683_v43 }
 0x9f2   : > { %2007 = vmatpush.msra.mxu1 %v3343_v52  ;;  %2034 = vmatpush.msrb.mxu2 %v3322_v34 }
 0x9f3   : > { %v1685_v45 = vsub.f32 %v1683_v43, %v1684_v49  ;;  %1785 = vmatmul.f32.vlgmr.msrb.gmra.mxu3 %v1684_v49 }
 0x9f4   : > { %2009 = vmatpush.msra.mxu1 %v3357_v62  ;;  %2065 = vmatpush.msrb.mxu3 %v3298_v19 }
 0x9f5   : > { %v1686_v59 = vand.u32 4294901760, %v1685_v45  ;;  %2038 = vmatpush.msrb.mxu2 %v3355_v61 }
 0x9f6   : > { %2011 = vmatpush.msra.mxu1 %v3394_v23  ;;  %2067 = vmatpush.msrb.mxu3 %v3343_v52 }
 0x9f7   : > { %1687 = vmatmul.f32.vlgmr.msra.gmra.mxu0 %v1686_v59  ;;  %1843 = vmatmul.f32.vlgmr.msrb.gmra.mxu1 %v1682_v36 }
 0x9f8   : > { %1976 = vmatpush.msra.mxu0 %v3313_v27  ;;  %2069 = vmatpush.msrb.mxu3 %v3357_v62 }
 0x9f9   : > { %2042 = vmatpush.msrb.mxu2 %v3371_v6  ;;  %2168 = vmatpush.msrb.mxu1 %v3339_v48 }
 0x9fa   : > { %1979 = vmatpush.msra.mxu0 %v3348_v57  ;;  %2071 = vmatpush.msrb.mxu3 %v3394_v23 }
 0x9fb   : > { %2046 = vmatpush.msrb.mxu2 %v3406_v17  ;;  %2174 = vmatpush.msrb.mxu1 %v3368_v4 }
 0x9fc   : > { %1982 = vmatpush.msra.mxu0 %v3365_v3 }
 0x9fd   : > { %2180 = vmatpush.msrb.mxu1 %v3380_v14 }
 0x9fe   : > { %1985 = vmatpush.msra.mxu0 %v3399_v13 }
 0x9ff   : > { %1818 = vmatmul.f32.vlgmr.msrb.gmra.mxu0 %v1682_v36  ;;  %2186 = vmatpush.msrb.mxu1 %v3416_v35 }
 0xa00   : > { %2135 = vmatpush.msrb.mxu0 %v3298_v19 }
 0xa02   : > { %2137 = vmatpush.msrb.mxu0 %v3343_v52 }
 0xa04   : > { %2139 = vmatpush.msrb.mxu0 %v3357_v62 }
 0xa06   : > { %2141 = vmatpush.msrb.mxu0 %v3394_v23 }
 0xa6c   : > { %v1729_v60 = vpop.f32.mrf.mxu1 }
 0xa74   : > { %v1688_v1 = vpop.f32.mrf.mxu0  ;;  %v1759_v9 = vpop.f32.mrf.mxu2 }
 0xa75   : > { %v1730_v2 = vadd.f32 %v1729_v60, %v1688_v1  ;;  %v1844_v20 = vpop.f32.mrf.mxu1 }
 0xa76   : > { %v1786_v10 = vpop.f32.mrf.mxu3 }
 0xa77   : > { %v1760_v50 = vadd.f32 %v1759_v9, %v1730_v2 }
 0xa79   : > { %v1787_v15 = vadd.f32 %v1786_v10, %v1760_v50 }
 0xa7c   : > { %v1819_v16 = vpop.f32.mrf.mxu0 }
 0xa7d   : > { %v1820_v18 = vadd.f32 %v1819_v16, %v1787_v15 }
 0xa7f   : > { %v1845_v21 = vadd.f32 %v1844_v20, %v1820_v18 }
 0xa81   : > { %v1847_v58 = vadd.f32 %v1845_v21, %v3511_v5 }
 0xa83   : > { %3157 = vtanh.f32 %v1847_v58  ;;  %v3096_v24 = vmul.f32 -1.442695, %v1847_v58 }
 0xa85   : > { %3159 = vpow2.f32 %v3096_v24 }
 0xa89   : > { %v3158_v22 = vpop.eup %3157 }
 0xa8a   : > { %1870 = vrot.lane.b32.xlu1 %v3158_v22, %s3199_s23 }
 0xa8b   : > { %v3160_v8 = vpop.eup %3159 }
 0xa8c   : > { %v1851_v28 = vadd.f32 1.0, %v3160_v8 }
 0xa8e   : > { %3161 = vrcp.f32 %v1851_v28  ;;  %v1863_v29 = vand.u32 2147483648, %v1851_v28  ;;  %vm1857_vm4 = vweird.f32 %v1851_v28  ;;  %v1861_v33 = vand.u32 2147483647, %v1851_v28 }
 0xa90   : > { %v1864_v42 = vor.u32 1.1754944e-38, %v1863_v29  ;;  %vm1862_vm6 = vcmp.eq.f32.partialorder %v1861_v33, 8.507059e+37 }
 0xa94   : > { %v3162_v11 = vpop.eup %3161 }
 0xa95   : > { %v1853_v26 = vmul.f32 %v3162_v11, %v1851_v28  ;;  %vm1858_vm3 = vweird.f32 %v3162_v11 }
 0xa96   : > { %vm1859_vm5 = vmor %vm1857_vm4, %vm1858_vm3 }
 0xa97   : > { %v1854_v32 = vsub.f32 1.0, %v1853_v26 }
 0xa99   : > { %v1855_v30 = vmul.f32 %v3162_v11, %v1854_v32 }
 0xa9b   : > { %v1856_v31 = vadd.f32 %v3162_v11, %v1855_v30 }
 0xa9d   : > { %v1860_v5 = vsel %vm1859_vm5, %v3162_v11, %v1856_v31 }
 0xa9e   : > { %v1865_v25 = vsel %vm1862_vm6, %v1864_v42, %v1860_v5 }
 0xa9f   : > { %v1868_v39 = vmul.f32 %v1865_v25, %v3631_v47 }
 0xafc   : > { %v1871_v54 = vpop.permute.xlu1 %1870 }
 0xafd   : > { %v1873_v37 = vmul.f32 %v1871_v54, %v1865_v25 }
 0xaff   : > { %1875 = vrot.lane.b32.xlu2 %v1873_v37, %s3199_s23 }
 0xb59   : > { %v1876_v41 = vpop.permute.xlu2 %1875 }
 0xb5a   : > { %v3666_v44 = vadd.f32 %v1876_v41, %v1868_v39 }
 0xb5c   : > { %3163 = vtanh.f32 %v3666_v44 }
 0xb62   : > { %v3164_v46 = vpop.eup %3163 }
 0xb63   : > { %1881 = vrot.lane.b32.xlu0 %v3164_v46, %s3199_s23 }
 0xbd5   : > { %v1882_v51 = vpop.permute.xlu0 %1881 }
 0xbd6   : > { %v1884_v53 = vmul.f32 %v1882_v51, %v1865_v25 }
 0xbd8   : > { %1886 = vrot.lane.b32.xlu1 %v1884_v53, %s3200_s27 }
 0xc4a   : > { %v1887_v55 = vpop.permute.xlu1 %1886 }
 0xc4b   : > { %1889 = vst.msk [vmem:[#allocation2 + $0x20] sm:$0xff] %vm312_vm1, %v1887_v55  ;;  %v1890_v56 = vsel %vm312_vm1, %v1887_v55, 0 }
 0xc4c   : > { %v1912_v38 = vand.u32 4294901760, %v1890_v56 }
 0xc4e   : > { %v1913_v36 = vsub.f32 %v1890_v56, %v1912_v38  ;;  %1958 = vmatmul.f32.vlgmr.msra.gmra.mxu3 %v1912_v38 }
 0xc4f   : > { %2235 = vmatpush.msra.mxu3 %v3298_v19 }
 0xc50   : > { %v1914_v47 = vand.u32 4294901760, %v1913_v36  ;;  %1988 = vmatmul.f32.vlgmr.msra.gmra.mxu0 %v1913_v36 }
 0xc51   : > { %2237 = vmatpush.msra.mxu3 %v3343_v52  ;;  %2264 = vmatpush.msra.mxu0 %v3322_v34 }
 0xc52   : > { %v1915_v43 = vsub.f32 %v1913_v36, %v1914_v47  ;;  %2015 = vmatmul.f32.vlgmr.msra.gmra.mxu1 %v1914_v47 }
 0xc53   : > { %2239 = vmatpush.msra.mxu3 %v3357_v62  ;;  %2295 = vmatpush.msra.mxu1 %v3298_v19 }
 0xc54   : > { %v1916_v49 = vand.u32 4294901760, %v1915_v43  ;;  %2268 = vmatpush.msra.mxu0 %v3355_v61 }
 0xc55   : > { %2241 = vmatpush.msra.mxu3 %v3394_v23  ;;  %2297 = vmatpush.msra.mxu1 %v3343_v52 }
 0xc56   : > { %1917 = vmatmul.f32.vlgmr.msra.gmra.mxu2 %v1916_v49  ;;  %2073 = vmatmul.f32.vlgmr.msrb.gmra.mxu3 %v1912_v38 }
 0xc57   : > { %2206 = vmatpush.msra.mxu2 %v3313_v27  ;;  %2299 = vmatpush.msra.mxu1 %v3357_v62 }
 0xc58   : > { %2272 = vmatpush.msra.mxu0 %v3371_v6  ;;  %2398 = vmatpush.msrb.mxu3 %v3339_v48 }
 0xc59   : > { %2209 = vmatpush.msra.mxu2 %v3348_v57  ;;  %2301 = vmatpush.msra.mxu1 %v3394_v23 }
 0xc5a   : > { %2276 = vmatpush.msra.mxu0 %v3406_v17  ;;  %2404 = vmatpush.msrb.mxu3 %v3368_v4 }
 0xc5b   : > { %2212 = vmatpush.msra.mxu2 %v3365_v3 }
 0xc5c   : > { %2410 = vmatpush.msrb.mxu3 %v3380_v14 }
 0xc5d   : > { %2215 = vmatpush.msra.mxu2 %v3399_v13 }
 0xc5e   : > { %2048 = vmatmul.f32.vlgmr.msrb.gmra.mxu2 %v1912_v38  ;;  %2416 = vmatpush.msrb.mxu3 %v3416_v35 }
 0xc5f   : > { %2365 = vmatpush.msrb.mxu2 %v3298_v19 }
 0xc61   : > { %2367 = vmatpush.msrb.mxu2 %v3343_v52 }
 0xc63   : > { %2369 = vmatpush.msrb.mxu2 %v3357_v62 }
 0xc65   : > { %2371 = vmatpush.msrb.mxu2 %v3394_v23 }
 0xccd   : > { %v1989_v59 = vpop.f32.mrf.mxu0 }
 0xccf   : > { %v2016_v1 = vpop.f32.mrf.mxu1 }
 0xcd1   : > { %v1959_v48 = vpop.f32.mrf.mxu3 }
 0xcd9   : > { %v1918_v45 = vpop.f32.mrf.mxu2  ;;  %v2074_v50 = vpop.f32.mrf.mxu3 }
 0xcda   : > { %v1960_v4 = vadd.f32 %v1959_v48, %v1918_v45 }
 0xcdc   : > { %v1990_v60 = vadd.f32 %v1989_v59, %v1960_v4 }
 0xcde   : > { %v2017_v14 = vadd.f32 %v2016_v1, %v1990_v60 }
 0xce1   : > { %v2049_v2 = vpop.f32.mrf.mxu2 }
 0xce2   : > { %v2050_v9 = vadd.f32 %v2049_v2, %v2017_v14 }
 0xce4   : > { %v2075_v10 = vadd.f32 %v2074_v50, %v2050_v9 }
 0xce6   : > { %v2077_v35 = vadd.f32 %v2075_v10, %v3513_v0 }
 0xce8   : > { %3165 = vtanh.f32 %v2077_v35  ;;  %v3097_v16 = vmul.f32 -1.442695, %v2077_v35 }
 0xcea   : > { %3167 = vpow2.f32 %v3097_v16 }
 0xcee   : > { %v3166_v15 = vpop.eup %3165 }
 0xcef   : > { %2100 = vrot.lane.b32.xlu2 %v3166_v15, %s3199_s23 }
 0xcf0   : > { %v3168_v18 = vpop.eup %3167 }
 0xcf1   : > { %v2081_v20 = vadd.f32 1.0, %v3168_v18 }
 0xcf3   : > { %3169 = vrcp.f32 %v2081_v20  ;;  %v2093_v28 = vand.u32 2147483648, %v2081_v20  ;;  %vm2087_vm8 = vweird.f32 %v2081_v20  ;;  %v2091_v11 = vand.u32 2147483647, %v2081_v20 }
 0xcf5   : > { %v2094_v26 = vor.u32 1.1754944e-38, %v2093_v28  ;;  %vm2092_vm10 = vcmp.eq.f32.partialorder %v2091_v11, 8.507059e+37 }
 0xcf9   : > { %v3170_v21 = vpop.eup %3169 }
 0xcfa   : > { %v2083_v58 = vmul.f32 %v3170_v21, %v2081_v20  ;;  %vm2088_vm7 = vweird.f32 %v3170_v21 }
 0xcfb   : > { %vm2089_vm9 = vmor %vm2087_vm8, %vm2088_vm7 }
 0xcfc   : > { %v2084_v22 = vsub.f32 1.0, %v2083_v58 }
 0xcfe   : > { %v2085_v24 = vmul.f32 %v3170_v21, %v2084_v22 }
 0xd00   : > { %v2086_v8 = vadd.f32 %v3170_v21, %v2085_v24 }
 0xd02   : > { %v2090_v0 = vsel %vm2089_vm9, %v3170_v21, %v2086_v8 }
 0xd03   : > { %v2095_v30 = vsel %vm2092_vm10, %v2094_v26, %v2090_v0 }
 0xd04   : > { %v2098_v29 = vmul.f32 %v2095_v30, %v3666_v44 }
 0xd49   : > { %v2101_v32 = vpop.permute.xlu2 %2100 }
 0xd4a   : > { %v2103_v31 = vmul.f32 %v2101_v32, %v2095_v30 }
 0xd4c   : > { %2105 = vrot.lane.b32.xlu0 %v2103_v31, %s3199_s23 }
 0xdbe   : > { %v2106_v33 = vpop.permute.xlu0 %2105 }
 0xdbf   : > { %v3701_v5 = vadd.f32 %v2106_v33, %v2098_v29  ;;  %v684_v33 = vadd.f32 %v3586_v63, %v3497_v12 }
 0xdc1   : > { %3171 = vtanh.f32 %v3701_v5 }
 0xdc7   : > { %v3172_v42 = vpop.eup %3171 }
 0xdc8   : > { %2111 = vrot.lane.b32.xlu1 %v3172_v42, %s3199_s23 }
 0xe3a   : > { %v2112_v54 = vpop.permute.xlu1 %2111 }
 0xe3b   : > { %v2114_v25 = vmul.f32 %v2112_v54, %v2095_v30  ;;  %v737_v54 = vadd.f32 %v3588_v40, %v684_v33 }
 0xe3d   : > { %2116 = vrot.lane.b32.xlu2 %v2114_v25, %s3200_s27 }
 0xe97   : > { %v2117_v37 = vpop.permute.xlu2 %2116 }
 0xe98   : > { %2119 = vst.msk [vmem:[#allocation2 + $0x28] sm:$0xff] %vm312_vm1, %v2117_v37  ;;  %v2120_v39 = vsel %vm312_vm1, %v2117_v37, 0 }
 0xe99   : > { %v2142_v41 = vand.u32 4294901760, %v2120_v39 }
 0xe9b   : > { %v2143_v46 = vsub.f32 %v2120_v39, %v2142_v41  ;;  %2188 = vmatmul.f32.vlgmr.msrb.gmra.mxu1 %v2142_v41 }
 0xe9c   : > { %2465 = vmatpush.msrb.mxu1 %v3298_v19 }
 0xe9d   : > { %v2144_v44 = vand.u32 4294901760, %v2143_v46  ;;  %2218 = vmatmul.f32.vlgmr.msra.gmra.mxu2 %v2143_v46 }
 0xe9e   : > { %2467 = vmatpush.msrb.mxu1 %v3343_v52  ;;  %2494 = vmatpush.msra.mxu2 %v3322_v34 }
 0xe9f   : > { %v2145_v51 = vsub.f32 %v2143_v46, %v2144_v44  ;;  %2245 = vmatmul.f32.vlgmr.msra.gmra.mxu3 %v2144_v44 }
 0xea0   : > { %2469 = vmatpush.msrb.mxu1 %v3357_v62  ;;  %2525 = vmatpush.msra.mxu3 %v3298_v19 }
 0xea1   : > { %v2146_v53 = vand.u32 4294901760, %v2145_v51  ;;  %2498 = vmatpush.msra.mxu2 %v3355_v61 }
 0xea2   : > { %2471 = vmatpush.msrb.mxu1 %v3394_v23  ;;  %2527 = vmatpush.msra.mxu3 %v3343_v52 }
 0xea3   : > { %2147 = vmatmul.f32.vlgmr.msrb.gmra.mxu0 %v2146_v53  ;;  %2303 = vmatmul.f32.vlgmr.msra.gmra.mxu1 %v2142_v41 }
 0xea4   : > { %2436 = vmatpush.msrb.mxu0 %v3313_v27  ;;  %2529 = vmatpush.msra.mxu3 %v3357_v62 }
 0xea5   : > { %2502 = vmatpush.msra.mxu2 %v3371_v6 }
 0xea6   : > { %2439 = vmatpush.msrb.mxu0 %v3348_v57  ;;  %2531 = vmatpush.msra.mxu3 %v3394_v23 }
 0xea7   : > { %2506 = vmatpush.msra.mxu2 %v3406_v17 }
 0xea8   : > { %2442 = vmatpush.msrb.mxu0 %v3365_v3 }
 0xeaa   : > { %2445 = vmatpush.msrb.mxu0 %v3399_v13 }
 0xeab   : > { %2278 = vmatmul.f32.vlgmr.msra.gmra.mxu0 %v2142_v41 }
 0xf18   : > { %v2189_v19 = vpop.f32.mrf.mxu1 }
 0xf20   : > { %v2148_v34 = vpop.f32.mrf.mxu0  ;;  %v2219_v61 = vpop.f32.mrf.mxu2 }
 0xf21   : > { %v2190_v52 = vadd.f32 %v2189_v19, %v2148_v34  ;;  %v2304_v38 = vpop.f32.mrf.mxu1 }
 0xf22   : > { %v2246_v55 = vpop.f32.mrf.mxu3 }
 0xf23   : > { %v2220_v27 = vadd.f32 %v2219_v61, %v2190_v52 }
 0xf25   : > { %v2247_v62 = vadd.f32 %v2246_v55, %v2220_v27 }
 0xf28   : > { %v2279_v56 = vpop.f32.mrf.mxu0 }
 0xf29   : > { %v2280_v6 = vadd.f32 %v2279_v56, %v2247_v62 }
 0xf2b   : > { %v2305_v57 = vadd.f32 %v2304_v38, %v2280_v6 }
 0xf2d   : > { %v2307_v23 = vadd.f32 %v2305_v57, %v3515_v7 }
 0xf2f   : > { %3173 = vtanh.f32 %v2307_v23  ;;  %v3098_v3 = vmul.f32 -1.442695, %v2307_v23 }
 0xf31   : > { %3175 = vpow2.f32 %v3098_v3 }
 0xf35   : > { %v3174_v17 = vpop.eup %3173 }
 0xf36   : > { %2330 = vrot.lane.b32.xlu0 %v3174_v17, %s3199_s23 }
 0xf37   : > { %v3176_v13 = vpop.eup %3175 }
 0xf38   : > { %v2311_v36 = vadd.f32 1.0, %v3176_v13 }
 0xf3a   : > { %3177 = vrcp.f32 %v2311_v36  ;;  %v2323_v4 = vand.u32 2147483648, %v2311_v36  ;;  %vm2317_vm12 = vweird.f32 %v2311_v36  ;;  %v2321_v59 = vand.u32 2147483647, %v2311_v36 }
 0xf3c   : > { %v2324_v60 = vor.u32 1.1754944e-38, %v2323_v4  ;;  %vm2322_vm14 = vcmp.eq.f32.partialorder %v2321_v59, 8.507059e+37 }
 0xf40   : > { %v3178_v47 = vpop.eup %3177 }
 0xf41   : > { %v2313_v43 = vmul.f32 %v3178_v47, %v2311_v36  ;;  %vm2318_vm11 = vweird.f32 %v3178_v47 }
 0xf42   : > { %vm2319_vm13 = vmor %vm2317_vm12, %vm2318_vm11 }
 0xf43   : > { %v2314_v49 = vsub.f32 1.0, %v2313_v43 }
 0xf45   : > { %v2315_v48 = vmul.f32 %v3178_v47, %v2314_v49 }
 0xf47   : > { %v2316_v45 = vadd.f32 %v3178_v47, %v2315_v48 }
 0xf49   : > { %v2320_v7 = vsel %vm2319_vm13, %v3178_v47, %v2316_v45 }
 0xf4a   : > { %v2325_v14 = vsel %vm2322_vm14, %v2324_v60, %v2320_v7 }
 0xf4b   : > { %v2328_v9 = vmul.f32 %v2325_v14, %v3701_v5 }
 0xfa8   : > { %v2331_v1 = vpop.permute.xlu0 %2330 }
 0xfa9   : > { %v2333_v2 = vmul.f32 %v2331_v1, %v2325_v14 }
 0xfab   : > { %2335 = vrot.lane.b32.xlu1 %v2333_v2, %s3199_s23 }
0x101d   : > { %v2336_v50 = vpop.permute.xlu1 %2335 }
0x101e   : > { %v2338_v10 = vadd.f32 %v2336_v50, %v2328_v9 }
0x1020   : > { %3179 = vtanh.f32 %v2338_v10 }
0x1026   : > { %v3180_v35 = vpop.eup %3179 }
0x1027   : > { %2341 = vrot.lane.b32.xlu2 %v3180_v35, %s3199_s23 }
0x1081   : > { %v2342_v15 = vpop.permute.xlu2 %2341 }
0x1082   : > { %v2344_v16 = vmul.f32 %v2342_v15, %v2325_v14 }
0x1084   : > { %2346 = vrot.lane.b32.xlu0 %v2344_v16, %s3200_s27 }
0x10f6   : > { %v2347_v18 = vpop.permute.xlu0 %2346 }
0x10f7   : > { %2349 = vst.msk [vmem:[#allocation2 + $0x30] sm:$0xff] %vm312_vm1, %v2347_v18  ;;  %v2350_v20 = vsel %vm312_vm1, %v2347_v18, 0 }
0x10f8   : > { %v2372_v21 = vand.u32 4294901760, %v2350_v20 }
0x10fa   : > { %v2373_v58 = vsub.f32 %v2350_v20, %v2372_v21  ;;  %2418 = vmatmul.f32.vlgmr.msrb.gmra.mxu3 %v2372_v21 }
0x10fc   : > { %v2374_v22 = vand.u32 4294901760, %v2373_v58  ;;  %2448 = vmatmul.f32.vlgmr.msrb.gmra.mxu0 %v2373_v58 }
0x10fe   : > { %v2375_v24 = vsub.f32 %v2373_v58, %v2374_v22  ;;  %2475 = vmatmul.f32.vlgmr.msrb.gmra.mxu1 %v2374_v22 }
0x1100   : > { %v2376_v8 = vand.u32 4294901760, %v2375_v24 }
0x1102   : > { %2377 = vmatmul.f32.vlgmr.msrb.gmra.mxu2 %v2376_v8  ;;  %2533 = vmatmul.f32.vlgmr.msra.gmra.mxu3 %v2372_v21 }
0x110a   : > { %2508 = vmatmul.f32.vlgmr.msra.gmra.mxu2 %v2372_v21 }
0x1179   : > { %v2449_v26 = vpop.f32.mrf.mxu0 }
0x117b   : > { %v2476_v30 = vpop.f32.mrf.mxu1 }
0x117d   : > { %v2419_v28 = vpop.f32.mrf.mxu3 }
0x1185   : > { %v2378_v11 = vpop.f32.mrf.mxu2  ;;  %v2534_v42 = vpop.f32.mrf.mxu3 }
0x1186   : > { %v2420_v0 = vadd.f32 %v2419_v28, %v2378_v11 }
0x1188   : > { %v2450_v32 = vadd.f32 %v2449_v26, %v2420_v0 }
0x118a   : > { %v2477_v31 = vadd.f32 %v2476_v30, %v2450_v32 }
0x118d   : > { %v2509_v29 = vpop.f32.mrf.mxu2 }
0x118e   : > { %v2510_v5 = vadd.f32 %v2509_v29, %v2477_v31 }
0x1190   : > { %v2535_v25 = vadd.f32 %v2534_v42, %v2510_v5 }
0x1192   : > { %v2537_v37 = vadd.f32 %v2535_v25, %v737_v54 }
0x1194   : > { %3181 = vtanh.f32 %v2537_v37  ;;  %v3099_v41 = vmul.f32 -1.442695, %v2537_v37 }
0x1196   : > { %3183 = vpow2.f32 %v3099_v41 }
0x119a   : > { %v3182_v39 = vpop.eup %3181 }
0x119b   : > { %2560 = vrot.lane.b32.xlu1 %v3182_v39, %s3199_s23 }
0x119c   : > { %v3184_v46 = vpop.eup %3183 }
0x119d   : > { %v2541_v44 = vadd.f32 1.0, %v3184_v46 }
0x119f   : > { %3185 = vrcp.f32 %v2541_v44  ;;  %v2553_v63 = vand.u32 2147483648, %v2541_v44  ;;  %vm2547_vm0 = vweird.f32 %v2541_v44  ;;  %v2551_v40 = vand.u32 2147483647, %v2541_v44 }
0x11a1   : > { %v2554_v61 = vor.u32 1.1754944e-38, %v2553_v63  ;;  %vm2552_vm3 = vcmp.eq.f32.partialorder %v2551_v40, 8.507059e+37 }
0x11a5   : > { %v3186_v51 = vpop.eup %3185 }
0x11a6   : > { %v2543_v53 = vmul.f32 %v3186_v51, %v2541_v44  ;;  %vm2548_vm15 = vweird.f32 %v3186_v51 }
0x11a7   : > { %vm2549_vm2 = vmor %vm2547_vm0, %vm2548_vm15 }
0x11a8   : > { %v2544_v19 = vsub.f32 1.0, %v2543_v53 }
0x11aa   : > { %v2545_v34 = vmul.f32 %v3186_v51, %v2544_v19 }
0x11ac   : > { %v2546_v12 = vadd.f32 %v3186_v51, %v2545_v34 }
0x11ae   : > { %v2550_v52 = vsel %vm2549_vm2, %v3186_v51, %v2546_v12 }
0x11af   : > { %v2555_v55 = vsel %vm2552_vm3, %v2554_v61, %v2550_v52 }
0x11b0   : > { %v2558_v56 = vmul.f32 %v2555_v55, %v2338_v10 }
0x120d   : > { %v2561_v27 = vpop.permute.xlu1 %2560 }
0x120e   : > { %v2563_v62 = vmul.f32 %v2561_v27, %v2555_v55 }
0x1210   : > { %2565 = vrot.lane.b32.xlu2 %v2563_v62, %s3199_s23 }
0x126a   : > { %v2566_v6 = vpop.permute.xlu2 %2565 }
0x126b   : > { %v2568_v38 = vadd.f32 %v2566_v6, %v2558_v56 }
0x126d   : > { %3187 = vtanh.f32 %v2568_v38 }
0x1273   : > { %v3188_v57 = vpop.eup %3187 }
0x1274   : > { %2571 = vrot.lane.b32.xlu0 %v3188_v57, %s3199_s23 }
0x12e6   : > { %v2572_v23 = vpop.permute.xlu0 %2571 }
0x12e7   : > { %v2574_v17 = vmul.f32 %v2572_v23, %v2555_v55 }
0x12e9   : > { %2576 = vrot.lane.b32.xlu1 %v2574_v17, %s3200_s27 }
0x1358   : > { %2583 = sbr.rel (%p3100_p5) target bundleno = 5203 (0x1453), region = 52 }
0x135b   : > { %v2577_v3 = vpop.permute.xlu1 %2576 }
0x135c   : > { %2579 = vst.msk [vmem:[#allocation2 + $0x38] sm:$0xff] %vm312_vm1, %v2577_v3 }
0x135d   : > { %v2595_v13 = vld [vmem:[%s3938_s4 + $0x18] sm:$0xff]  ;;  %v2594_v36 = vld [vmem:[%s3938_s4 + $0x10] sm:$0xff]  ;;  %v2593_v47 = vld [vmem:[%s3938_s4 + $0x8] sm:$0xff] }
0x135e   : > { %v3750_v43 = vand.u32 4294901760, %v2595_v13  ;;  %v3752_v49 = vand.u32 4294901760, %v2594_v36  ;;  %v3754_v48 = vand.u32 4294901760, %v2593_v47  ;;  %v2592_v45 = vld [vmem:[%s3938_s4] sm:$0xff]  ;;  %v2589_v59 = vld [vmem:[#allocation2 + $0x28] sm:$0xff]  ;;  %v2590_v2 = vld [vmem:[#allocation2 + $0x30] sm:$0xff] }
0x135f   : > { %v2588_v4 = vld [vmem:[#allocation2 + $0x20] sm:$0xff]  ;;  %v3759_v7 = vand.u32 4294901760, %v2592_v45  ;;  %v2616_v1 = vsel %vm312_vm1, %v2589_v59, 0  ;;  %v2619_v20 = vsel %vm312_vm1, %v2590_v2, 0  ;;  %v2585_v5 = vld [vmem:[#allocation2 + $0x8] sm:$0xff]  ;;  %v2586_v42 = vld [vmem:[#allocation2 + $0x10] sm:$0xff] }
0x1360   : > { %v2613_v60 = vsel %vm312_vm1, %v2588_v4, 0  ;;  %v2584_v14 = vld [vmem:[#allocation2] sm:$0xff]  ;;  %3105 = vmatpush.msra.mxu2 %v3750_v43  ;;  %v2722_v9 = vsub.f32 %v2595_v13, %v3750_v43  ;;  %v2728_v10 = vsub.f32 %v2594_v36, %v3752_v49  ;;  %v2734_v35 = vsub.f32 %v2593_v47, %v3754_v48  ;;  %2637 = vmatpush.msra.mxu0 %v3750_v43  ;;  %v2587_v56 = vld [vmem:[#allocation2 + $0x18] sm:$0xff] }
0x1361   : > { %v3765_v50 = vand.u32 4294901760, %v2613_v60  ;;  %v3771_v15 = vsub.f32 %v2592_v45, %v3759_v7  ;;  %v3773_v16 = vand.u32 4294901760, %v2616_v1  ;;  %v2601_v18 = vsel %vm312_vm1, %v2584_v14, 0 }
0x1362   : > { %3106 = vmatpush.msra.mxu2 %v3752_v49  ;;  %v2723_v21 = vand.u32 4294901760, %v2722_v9  ;;  %v2729_v22 = vand.u32 4294901760, %v2728_v10  ;;  %v2735_v24 = vand.u32 4294901760, %v2734_v35  ;;  %2639 = vmatpush.msra.mxu0 %v3752_v49  ;;  %v3786_v11 = vand.u32 4294901760, %v2601_v18 }
0x1363   : > { %v3779_v58 = vsub.f32 %v2613_v60, %v3765_v50  ;;  %v2741_v8 = vand.u32 4294901760, %v3771_v15  ;;  %v3784_v28 = vsub.f32 %v2616_v1, %v3773_v16  ;;  %v3797_v33 = vand.u32 4294901760, %v2619_v20  ;;  %v2591_v53 = vld [vmem:[#allocation2 + $0x38] sm:$0xff] }
0x1364   : > { %3107 = vmatpush.msra.mxu2 %v3754_v48  ;;  %v2724_v0 = vsub.f32 %v2722_v9, %v2723_v21  ;;  %v2730_v32 = vsub.f32 %v2728_v10, %v2729_v22  ;;  %v2736_v30 = vsub.f32 %v2734_v35, %v2735_v24  ;;  %2641 = vmatpush.msra.mxu0 %v3754_v48  ;;  %v2604_v51 = vsel %vm312_vm1, %v2585_v5, 0 }
0x1365   : > { %v2678_v26 = vand.u32 4294901760, %v3779_v58  ;;  %v2742_v31 = vsub.f32 %v3771_v15, %v2741_v8  ;;  %v3795_v29 = vsub.f32 %v2601_v18, %v3786_v11  ;;  %v2686_v39 = vand.u32 4294901760, %v3784_v28 }
0x1366   : > { %3108 = vmatpush.msra.mxu2 %v3759_v7  ;;  %v2725_v54 = vand.u32 4294901760, %v2724_v0  ;;  %v2731_v37 = vand.u32 4294901760, %v2730_v32  ;;  %2643 = vmatpush.msra.mxu0 %v3759_v7  ;;  %v2737_v44 = vand.u32 4294901760, %v2736_v30  ;;  %v2607_v19 = vsel %vm312_vm1, %v2586_v42, 0  ;;  %v3889_v32 = vld [vmem:[%s3939_s5] ss:$0 sm:$0xff] }
0x1367   : > { %v2679_v25 = vsub.f32 %v3779_v58, %v2678_v26  ;;  %v2646_v41 = vand.u32 4294901760, %v3795_v29  ;;  %v3811_v12 = vand.u32 4294901760, %v2604_v51  ;;  %v2743_v63 = vand.u32 4294901760, %v2742_v31 }
0x1368   : > { %2792 = vmatpush.msrb.mxu2 %v2722_v9  ;;  %2927 = vmatpush.msrb.mxu0 %v2723_v21  ;;  %v2687_v40 = vsub.f32 %v3784_v28, %v2686_v39  ;;  %v3817_v52 = vsub.f32 %v2619_v20, %v3797_v33  ;;  %v3819_v61 = vand.u32 4294901760, %v2607_v19  ;;  %v2622_v62 = vsel %vm312_vm1, %v2591_v53, 0 }
0x1369   : > { %3109 = vmatpush.msra.mxu3 %v2725_v54  ;;  %v2680_v46 = vand.u32 4294901760, %v2679_v25  ;;  %2726 = vmatpush.msra.mxu1 %v2725_v54  ;;  %v2647_v34 = vsub.f32 %v3795_v29, %v2646_v41  ;;  %v2653_v55 = vsub.f32 %v2604_v51, %v3811_v12  ;;  %v3825_v17 = vand.u32 4294901760, %v2622_v62 }
0x136a   : > { %2795 = vmatpush.msrb.mxu2 %v2728_v10  ;;  %2931 = vmatpush.msrb.mxu0 %v2729_v22  ;;  %v2661_v38 = vsub.f32 %v2607_v19, %v3819_v61  ;;  %v2688_v57 = vand.u32 4294901760, %v2687_v40  ;;  %v2694_v23 = vand.u32 4294901760, %v3817_v52  ;;  %v2610_v3 = vsel %vm312_vm1, %v2587_v56, 0 }
0x136b   : > { %2681 = vmatmul.f32.vlgmr.msra.gmra.mxu2 %v2680_v46  ;;  %3110 = vmatpush.msra.mxu3 %v2731_v37  ;;  %v2648_v27 = vand.u32 4294901760, %v2647_v34  ;;  %v2654_v6 = vand.u32 4294901760, %v2653_v55  ;;  %v2668_v45 = vand.u32 4294901760, %v2610_v3  ;;  %v2701_v59 = vsub.f32 %v2622_v62, %v3825_v17 }
0x136c   : > { %2732 = vmatpush.msra.mxu1 %v2731_v37  ;;  %2798 = vmatpush.msrb.mxu2 %v2734_v35  ;;  %v2662_v47 = vand.u32 4294901760, %v2661_v38  ;;  %v2695_v4 = vsub.f32 %v3817_v52, %v2694_v23 }
0x136d   : > { %3111 = vmatpush.msra.mxu3 %v2737_v44  ;;  %2935 = vmatpush.msrb.mxu0 %v2735_v24  ;;  %v2655_v13 = vsub.f32 %v2653_v55, %v2654_v6  ;;  %v2669_v60 = vsub.f32 %v2610_v3, %v2668_v45  ;;  %v2702_v14 = vand.u32 4294901760, %v2701_v59 }
0x136e   : > { %2738 = vmatpush.msra.mxu1 %v2737_v44  ;;  %2649 = vmatmul.f32.vlgmr.msra.gmra.mxu0 %v2648_v27  ;;  %v2696_v1 = vand.u32 4294901760, %v2695_v4 }
0x136f   : > { %3112 = vmatpush.msra.mxu3 %v2743_v63  ;;  %2801 = vmatpush.msrb.mxu2 %v3771_v15  ;;  %v2656_v36 = vand.u32 4294901760, %v2655_v13  ;;  %v2670_v9 = vand.u32 4294901760, %v2669_v60 }
0x1370   : > { %2762 = vmatmul.f32.vlgmr.msra.gmra.mxu3 %v3765_v50  ;;  %2744 = vmatpush.msra.mxu1 %v2743_v63 }
0x1371   : > { %2856 = vmatpush.msrb.mxu3 %v3750_v43  ;;  %2746 = vmatmul.f32.vlgmr.msra.gmra.mxu1 %v3786_v11  ;;  %v2671_v10 = vsub.f32 %v2669_v60, %v2670_v9 }
0x1372   : > { %2986 = vmatpush.msrb.mxu1 %v3750_v43  ;;  %2939 = vmatpush.msrb.mxu0 %v2741_v8  ;;  %v2663_v43 = vsub.f32 %v2661_v38, %v2662_v47 }
0x1373   : > { %2689 = vmatmul.f32.gmra.mxu2 %v2688_v57  ;;  %2858 = vmatpush.msrb.mxu3 %v3752_v49 }
0x1374   : > { %2988 = vmatpush.msrb.mxu1 %v3752_v49  ;;  %v2664_v2 = vand.u32 4294901760, %v2663_v43  ;;  %v2703_v49 = vsub.f32 %v2701_v59, %v2702_v14 }
0x1375   : > { %2860 = vmatpush.msrb.mxu3 %v3754_v48 }
0x1376   : > { %2657 = vmatmul.f32.gmra.mxu0 %v2656_v36  ;;  %2990 = vmatpush.msrb.mxu1 %v3754_v48  ;;  %v2704_v35 = vand.u32 4294901760, %v2703_v49  ;;  %v2672_v48 = vand.u32 4294901760, %v2671_v10 }
0x1377   : > { %2862 = vmatpush.msrb.mxu3 %v3759_v7 }
0x1378   : > { %2766 = vmatmul.f32.gmra.mxu3 %v3773_v16  ;;  %2992 = vmatpush.msrb.mxu1 %v3759_v7 }
0x1379   : > { %2750 = vmatmul.f32.gmra.mxu1 %v3811_v12 }
0x137b   : > { %2697 = vmatmul.f32.gmra.mxu2 %v2696_v1 }
0x137e   : > { %2665 = vmatmul.f32.gmra.mxu0 %v2664_v2 }
0x1380   : > { %2770 = vmatmul.f32.gmra.mxu3 %v3797_v33 }
0x1381   : > { %2754 = vmatmul.f32.gmra.mxu1 %v3819_v61 }
0x1383   : > { %2705 = vmatmul.f32.gmra.mxu2 %v2704_v35 }
0x1386   : > { %2673 = vmatmul.f32.gmra.mxu0 %v2672_v48 }
0x1388   : > { %2774 = vmatmul.f32.gmra.mxu3 %v3825_v17 }
0x1389   : > { %2758 = vmatmul.f32.gmra.mxu1 %v2668_v45 }
0x138b   : > { %2804 = vmatmul.f32.vlgmr.msrb.gmra.mxu2 %v3795_v29 }
0x138e   : > { %2941 = vmatmul.f32.vlgmr.msrb.gmra.mxu0 %v3786_v11 }
0x1390   : > { %2866 = vmatmul.f32.vlgmr.msrb.gmra.mxu3 %v2646_v41 }
0x1391   : > { %2994 = vmatmul.f32.vlgmr.msrb.gmra.mxu1 %v3786_v11 }
0x1393   : > { %2809 = vmatmul.f32.gmra.mxu2 %v2653_v55 }
0x1396   : > { %2945 = vmatmul.f32.gmra.mxu0 %v3811_v12 }
0x1398   : > { %2872 = vmatmul.f32.gmra.mxu3 %v2654_v6 }
0x1399   : > { %2998 = vmatmul.f32.gmra.mxu1 %v3811_v12 }
0x139b   : > { %2814 = vmatmul.f32.gmra.mxu2 %v2661_v38 }
0x139e   : > { %2949 = vmatmul.f32.gmra.mxu0 %v3819_v61 }
0x13a0   : > { %2878 = vmatmul.f32.gmra.mxu3 %v2662_v47 }
0x13a1   : > { %3002 = vmatmul.f32.gmra.mxu1 %v3819_v61 }
0x13a3   : > { %2819 = vmatmul.f32.gmra.mxu2 %v2669_v60 }
0x13a6   : > { %2953 = vmatmul.f32.gmra.mxu0 %v2668_v45 }
0x13a8   : > { %2884 = vmatmul.f32.gmra.mxu3 %v2670_v9 }
0x13a9   : > { %3006 = vmatmul.f32.gmra.mxu1 %v2668_v45 }
0x13ab   : > { %2824 = vmatmul.f32.gmra.mxu2 %v3779_v58 }
0x13ae   : > { %2957 = vmatmul.f32.gmra.mxu0 %v3765_v50 }
0x13b0   : > { %2890 = vmatmul.f32.gmra.mxu3 %v2678_v26 }
0x13b1   : > { %3010 = vmatmul.f32.gmra.mxu1 %v3765_v50 }
0x13b3   : > { %2829 = vmatmul.f32.gmra.mxu2 %v3784_v28 }
0x13b6   : > { %2961 = vmatmul.f32.gmra.mxu0 %v3773_v16 }
0x13b8   : > { %2896 = vmatmul.f32.gmra.mxu3 %v2686_v39 }
0x13b9   : > { %3014 = vmatmul.f32.gmra.mxu1 %v3773_v16 }
0x13bb   : > { %2834 = vmatmul.f32.gmra.mxu2 %v3817_v52 }
0x13be   : > { %2965 = vmatmul.f32.gmra.mxu0 %v3797_v33 }
0x13c0   : > { %2902 = vmatmul.f32.gmra.mxu3 %v2694_v23 }
0x13c1   : > { %3018 = vmatmul.f32.gmra.mxu1 %v3797_v33 }
0x13c3   : > { %2839 = vmatmul.f32.gmra.mxu2 %v2701_v59 }
0x13c6   : > { %2969 = vmatmul.f32.gmra.mxu0 %v3825_v17 }
0x13c8   : > { %2908 = vmatmul.f32.gmra.mxu3 %v2702_v14 }
0x13c9   : > { %3022 = vmatmul.f32.gmra.mxu1 %v3825_v17 }
0x13eb   : > { %v2650_v7 = vpop.f32.mrf.mxu0 }
0x13ec   : > { %v2651_v29 = vadd.f32 %v3889_v32, %v2650_v7 }
0x13ee   : > { %v2682_v50 = vpop.f32.mrf.mxu2  ;;  %v2747_v15 = vpop.f32.mrf.mxu1 }
0x13ef   : > { %v2748_v42 = vadd.f32 %v2747_v15, %v2651_v29  ;;  %v2683_v43 = vadd.f32 %v3889_v32, %v2682_v50 }
0x13f3   : > { %v2763_v18 = vpop.f32.mrf.mxu3  ;;  %v2658_v16 = vpop.f32.mrf.mxu0 }
0x13f4   : > { %v2659_v39 = vadd.f32 %v3889_v32, %v2658_v16  ;;  %v2764_v49 = vadd.f32 %v2763_v18, %v2683_v43 }
0x13f6   : > { %v3876_v20 = vpop.f32.mrf.mxu2  ;;  %v2751_v21 = vpop.f32.mrf.mxu1 }
0x13f7   : > { %v2752_v53 = vadd.f32 %v2751_v21, %v2659_v39  ;;  %v2691_v7 = vadd.f32 %v3889_v32, %v3876_v20 }
0x13fb   : > { %v3878_v58 = vpop.f32.mrf.mxu3  ;;  %v2666_v22 = vpop.f32.mrf.mxu0 }
0x13fc   : > { %v2667_v40 = vadd.f32 %v3889_v32, %v2666_v22  ;;  %v2768_v22 = vadd.f32 %v3878_v58, %v2691_v7 }
0x13fe   : > { %v3880_v24 = vpop.f32.mrf.mxu2  ;;  %v2755_v8 = vpop.f32.mrf.mxu1 }
0x13ff   : > { %v2756_v62 = vadd.f32 %v2755_v8, %v2667_v40 }
0x1403   : > { %v3882_v28 = vpop.f32.mrf.mxu3  ;;  %v2674_v11 = vpop.f32.mrf.mxu0 }
0x1404   : > { %v2675_v23 = vadd.f32 %v3889_v32, %v2674_v11 }
0x1406   : > { %v3884_v0 = vpop.f32.mrf.mxu2  ;;  %v2759_v26 = vpop.f32.mrf.mxu1 }
0x1407   : > { %v2760_v47 = vadd.f32 %v2759_v26, %v2675_v23  ;;  %v2707_v39 = vadd.f32 %v3889_v32, %v3884_v0 }
0x140b   : > { %v3891_v30 = vpop.f32.mrf.mxu3  ;;  %v2942_v31 = vpop.f32.mrf.mxu0 }
0x140e   : > { %v2805_v33 = vpop.f32.mrf.mxu2  ;;  %v2995_v5 = vpop.f32.mrf.mxu1 }
0x140f   : > { %v2806_v54 = vadd.f32 %v2805_v33, %v2748_v42 }
0x1413   : > { %v2867_v25 = vpop.f32.mrf.mxu3  ;;  %v2946_v37 = vpop.f32.mrf.mxu0 }
0x1414   : > { %v2868_v41 = vadd.f32 %v2867_v25, %v2806_v54 }
0x1416   : > { %v2810_v46 = vpop.f32.mrf.mxu2  ;;  %v2943_v44 = vadd.f32 %v2942_v31, %v2868_v41  ;;  %v2999_v51 = vpop.f32.mrf.mxu1  ;;  %v2699_v31 = vadd.f32 %v3889_v32, %v3880_v24 }
0x1417   : > { %v2811_v34 = vadd.f32 %v2810_v46, %v2752_v53 }
0x1418   : > { %v2996_v19 = vadd.f32 %v2995_v5, %v2943_v44  ;;  %v2772_v5 = vadd.f32 %v3882_v28, %v2699_v31  ;;  %v2776_v44 = vadd.f32 %v3891_v30, %v2707_v39 }
0x141a   : > { %3026 = vst [vmem:[%s3940_s6] sm:$0xff] %v2996_v19 }
0x141b   : > { %v2873_v12 = vpop.f32.mrf.mxu3  ;;  %v2950_v63 = vpop.f32.mrf.mxu0 }
0x141c   : > { %v2874_v52 = vadd.f32 %v2873_v12, %v2811_v34 }
0x141e   : > { %v2815_v61 = vpop.f32.mrf.mxu2  ;;  %v2947_v27 = vadd.f32 %v2946_v37, %v2874_v52  ;;  %v3003_v55 = vpop.f32.mrf.mxu1 }
0x141f   : > { %v2816_v6 = vadd.f32 %v2815_v61, %v2756_v62 }
0x1420   : > { %v3000_v56 = vadd.f32 %v2999_v51, %v2947_v27 }
0x1422   : > { %3027 = vst [vmem:[%s3940_s6 + $0x8] sm:$0xff] %v3000_v56 }
0x1423   : > { %v2879_v38 = vpop.f32.mrf.mxu3  ;;  %v2954_v57 = vpop.f32.mrf.mxu0 }
0x1424   : > { %v2880_v17 = vadd.f32 %v2879_v38, %v2816_v6 }
0x1426   : > { %v2820_v3 = vpop.f32.mrf.mxu2  ;;  %v2951_v13 = vadd.f32 %v2950_v63, %v2880_v17  ;;  %v3007_v36 = vpop.f32.mrf.mxu1 }
0x1427   : > { %v2821_v4 = vadd.f32 %v2820_v3, %v2760_v47 }
0x1428   : > { %v3004_v45 = vadd.f32 %v3003_v55, %v2951_v13 }
0x142a   : > { %3028 = vst [vmem:[%s3940_s6 + $0x10] sm:$0xff] %v3004_v45 }
0x142b   : > { %v2885_v59 = vpop.f32.mrf.mxu3  ;;  %v2958_v1 = vpop.f32.mrf.mxu0 }
0x142c   : > { %v2886_v60 = vadd.f32 %v2885_v59, %v2821_v4 }
0x142e   : > { %v2825_v14 = vpop.f32.mrf.mxu2  ;;  %v2955_v2 = vadd.f32 %v2954_v57, %v2886_v60  ;;  %v3011_v9 = vpop.f32.mrf.mxu1 }
0x142f   : > { %v2826_v35 = vadd.f32 %v2825_v14, %v2764_v49 }
0x1430   : > { %v3008_v10 = vadd.f32 %v3007_v36, %v2955_v2 }
0x1432   : > { %3029 = vst [vmem:[%s3940_s6 + $0x18] sm:$0xff] %v3008_v10 }
0x1433   : > { %v2891_v48 = vpop.f32.mrf.mxu3  ;;  %v2962_v50 = vpop.f32.mrf.mxu0 }
0x1434   : > { %v2892_v15 = vadd.f32 %v2891_v48, %v2826_v35 }
0x1436   : > { %v2830_v16 = vpop.f32.mrf.mxu2  ;;  %v2959_v21 = vadd.f32 %v2958_v1, %v2892_v15  ;;  %v3015_v11 = vpop.f32.mrf.mxu1 }
0x1437   : > { %v2831_v26 = vadd.f32 %v2830_v16, %v2768_v22 }
0x1438   : > { %v3012_v8 = vadd.f32 %v3011_v9, %v2959_v21 }
0x143a   : > { %3030 = vst [vmem:[%s3940_s6 + $0x20] sm:$0xff] %v3012_v8 }
0x143b   : > { %v2897_v18 = vpop.f32.mrf.mxu3  ;;  %v2966_v54 = vpop.f32.mrf.mxu0 }
0x143c   : > { %v2898_v29 = vadd.f32 %v2897_v18, %v2831_v26 }
0x143e   : > { %v2835_v33 = vpop.f32.mrf.mxu2  ;;  %v2963_v20 = vadd.f32 %v2962_v50, %v2898_v29  ;;  %v3019_v37 = vpop.f32.mrf.mxu1 }
0x143f   : > { %v2836_v25 = vadd.f32 %v2835_v33, %v2772_v5 }
0x1440   : > { %v3016_v42 = vadd.f32 %v3015_v11, %v2963_v20 }
0x1442   : > { %3031 = vst [vmem:[%s3940_s6 + $0x28] sm:$0xff] %v3016_v42 }
0x1443   : > { %v2903_v58 = vpop.f32.mrf.mxu3  ;;  %v2970_v19 = vpop.f32.mrf.mxu0 }
0x1444   : > { %v2904_v41 = vadd.f32 %v2903_v58, %v2836_v25 }
0x1446   : > { %v2967_v46 = vadd.f32 %v2966_v54, %v2904_v41  ;;  %v2840_v24 = vpop.f32.mrf.mxu2  ;;  %v3023_v12 = vpop.f32.mrf.mxu1 }
0x1447   : > { %v2841_v53 = vadd.f32 %v2840_v24, %v2776_v44 }
0x1448   : > { %v3020_v51 = vadd.f32 %v3019_v37, %v2967_v46 }
0x144a   : > { %3032 = vst [vmem:[%s3940_s6 + $0x30] sm:$0xff] %v3020_v51 }
0x144b   : > { %v2909_v28 = vpop.f32.mrf.mxu3 }
0x144c   : > { %v2910_v34 = vadd.f32 %v2909_v28, %v2841_v53 }
0x144e   : > { %v2971_v63 = vadd.f32 %v2970_v19, %v2910_v34 }
0x1450   : > { %v3024_v40 = vadd.f32 %v3023_v12, %v2971_v63 }
0x1452   : > { %3033 = vst [vmem:[%s3940_s6 + $0x38] sm:$0xff] %v3024_v40 }
0x1453 PF: > { %s16_s21 = sadd.s32 1, %s3196_s21  }
0x1454   : > { %p13_p6 = scmp.ge.s32.totalorder %s16_s21, 14  }
0x1456   :  { %15 = sbr.rel (!%p13_p6) target bundleno = 1 (0x1), region = 84 }

</bundles_post_ra>
